<compile_context>
chip_gen: v7x
topology: tpu7x:2x2x1
jax: 0.10.0
libtpu: 0.0.40
codegen_flags: <defaults>
</compile_context>

<pallas_src>
import functools

import jax
import jax.numpy as jnp
from jax.experimental import pallas as pl
from jax.experimental.pallas import tpu as pltpu

_K = 3        # conv kernel size
_LANE = 128   # TPU lane width


# ----------------------------------------------------------------------------
# In-kernel math helpers (VPU/EUP-friendly primitives only)
# ----------------------------------------------------------------------------
def _erf(z):
    # Abramowitz & Stegun 7.1.26 polynomial erf; only mul/add/where/abs/exp and an
    # approximate EUP reciprocal are used (no erf lowering rule needed).
    a1, a2, a3, a4, a5 = (0.254829592, -0.284496736, 1.421413741,
                          -1.453152027, 1.061405429)
    p = 0.3275911
    sign = jnp.where(z >= 0.0, 1.0, -1.0)
    za = jnp.abs(z)
    t = pl.reciprocal(1.0 + p * za, approx=True)        # EUP slot, not VALU divide
    poly = ((((a5 * t + a4) * t + a3) * t + a2) * t + a1) * t
    return sign * (1.0 - poly * jnp.exp(-za * za))


def _gelu(x):
    # erf-based GELU, matching torch.nn.functional.gelu default (f32 math).
    return 0.5 * x * (1.0 + _erf(x * 0.7071067811865476))


def _taps(g, d):
    # Build [g[t-d], g[t], g[t+d]] concatenated along channels (out-of-range -> 0).
    # Static zero-padded slices: unambiguous, per-batch (the grid is per-batch, so no
    # cross-batch leakage is possible).  Returns (T, 3*C).
    T, C = g.shape
    if d >= T:
        z = jnp.zeros_like(g)
        return jnp.concatenate([z, g, z], axis=-1)
    z = jnp.zeros((d, C), g.dtype)
    g_m = jnp.concatenate([z, g[:T - d, :]], axis=0)     # g_m[t] = g[t-d]
    g_p = jnp.concatenate([g[d:, :], z], axis=0)         # g_p[t] = g[t+d]
    return jnp.concatenate([g_m, g, g_p], axis=-1)


def _dconv(g, w_packed_ref, b_ref, d):
    # "same"-padded dilated conv (K=3) as ONE MXU matmul with K = 3*Cin.
    taps = _taps(g, d).astype(jnp.bfloat16)
    return (jnp.dot(taps, w_packed_ref[...], preferred_element_type=jnp.float32)
            + b_ref[...])


# ----------------------------------------------------------------------------
# Fused forward kernel: one grid step = one batch element, everything in VMEM
# ----------------------------------------------------------------------------
def _fsnet_kernel(*refs, dilations, has_proj):
    # refs = x, fc_w, fc_b,
    #        per block: c1_wpacked, c1_b, c2_wpacked, c2_b, [proj_w, proj_b],
    #        reg_w_padded, reg_b_padded, o_ref
    o_ref = refs[-1]
    it = iter(refs[:-1])
    x_ref, fcw_ref, fcb_ref = next(it), next(it), next(it)

    x = x_ref[...]                                             # (T, Din) f32
    # TSEncoder: zero timesteps containing NaN (before and after input_fc; the
    # eval-mode 'all_true' mask reduces to the nan mask).
    nan_row = jnp.max(jnp.where(x != x, 1.0, 0.0), axis=-1, keepdims=True)
    x = jnp.where(nan_row > 0.0, 0.0, x)

    h = (jnp.dot(x.astype(jnp.bfloat16), fcw_ref[...],
                 preferred_element_type=jnp.float32) + fcb_ref[...])
    h = jnp.where(nan_row > 0.0, 0.0, h)

    # DilatedConvEncoder (depth+1 ConvBlocks), fully unrolled
    for d, hp in zip(dilations, has_proj):
        c1w, c1b, c2w, c2b = next(it), next(it), next(it), next(it)
        if hp:
            pw, pb = next(it), next(it)
            res = (jnp.dot(h.astype(jnp.bfloat16), pw[...],
                           preferred_element_type=jnp.float32) + pb[...])
        else:
            res = h
        g = _gelu(h)
        c = _dconv(g, c1w, c1b, d)
        g = _gelu(c)
        c = _dconv(g, c2w, c2b, d)
        h = c + res

    # last-timestep readout (plain static slice) + regressor (lane-padded output)
    rw_ref, rb_ref = next(it), next(it)
    rep = h[h.shape[0] - 1:, :]                                # (1, Co)
    out = (jnp.dot(rep.astype(jnp.bfloat16), rw_ref[...],
                   preferred_element_type=jnp.float32) + rb_ref[...])
    o_ref[...] = out.astype(o_ref.dtype)


# ----------------------------------------------------------------------------
# Static block plan
# ----------------------------------------------------------------------------
def _block_plan(args):
    depth = args["depth"]
    H = args["enc_hidden_dim"]
    Co = args["enc_output_dim"]
    channels = [H] * depth + [Co]
    plan, in_ch = [], H
    for i, out_ch in enumerate(channels):
        final = i == len(channels) - 1
        plan.append(dict(dilation=2 ** i,
                         has_proj=(in_ch != out_ch or final),
                         in_ch=in_ch, out_ch=out_ch))
        in_ch = out_ch
    return plan


# ----------------------------------------------------------------------------
# Parameter construction (deterministic, synthetic)
# ----------------------------------------------------------------------------
def init_params(key, args):
    input_dims = args["enc_in"] + 7
    H = args["enc_hidden_dim"]
    Co = args["enc_output_dim"]
    dim = args["c_out"] * args["pred_len"]

    def dense(k, fi, fo):
        k1, k2 = jax.random.split(k)
        return {"w": 0.05 * jax.random.normal(k1, (fi, fo), jnp.float32),
                "b": 0.01 * jax.random.normal(k2, (1, fo), jnp.float32)}

    def conv(k, ci, co):
        k1, k2 = jax.random.split(k)
        return {"w": 0.05 * jax.random.normal(k1, (_K, ci, co), jnp.float32),
                "b": 0.01 * jax.random.normal(k2, (1, co), jnp.float32)}

    plan = _block_plan(args)
    keys = jax.random.split(key, 2 + 3 * len(plan))
    params = {"input_fc": dense(keys[0], input_dims, H)}
    blocks, kidx = [], 1
    for blk in plan:
        blocks.append({
            "conv1": conv(keys[kidx], blk["in_ch"], blk["out_ch"]),
            "conv2": conv(keys[kidx + 1], blk["out_ch"], blk["out_ch"]),
            "proj": (dense(keys[kidx + 2], blk["in_ch"], blk["out_ch"])
                     if blk["has_proj"] else None),
        })
        kidx += 3
    params["blocks"] = blocks
    params["regressor"] = dense(keys[-1], Co, dim)
    return params


# ----------------------------------------------------------------------------
# Model forward: one fused pallas_call, grid over batch
# ----------------------------------------------------------------------------
def model_forward(params, x, args):
    B, T, Din = x.shape
    plan = _block_plan(args)
    H = args["enc_hidden_dim"]
    Co = args["enc_output_dim"]
    dim = args["c_out"] * args["pred_len"]
    out_pad = max(_LANE, ((dim + _LANE - 1) // _LANE) * _LANE)   # lane-dense output
    bf = jnp.bfloat16

    # --- flatten inputs: weights pre-packed (K*Cin, Cout) and cast to bf16 -------
    flat = [x,
            params["input_fc"]["w"].astype(bf),
            params["input_fc"]["b"]]
    has_proj, dilations = [], []
    for blk_p, blk in zip(plan, params["blocks"]):
        ci, co = blk_p["in_ch"], blk_p["out_ch"]
        flat += [blk["conv1"]["w"].reshape(_K * ci, co).astype(bf), blk["conv1"]["b"],
                 blk["conv2"]["w"].reshape(_K * co, co).astype(bf), blk["conv2"]["b"]]
        if blk_p["has_proj"]:
            flat += [blk["proj"]["w"].astype(bf), blk["proj"]["b"]]
        has_proj.append(blk_p["has_proj"])
        dilations.append(blk_p["dilation"])
    rw_pad = (jnp.zeros((Co, out_pad), jnp.float32)
              .at[:, :dim].set(params["regressor"]["w"]).astype(bf))
    rb_pad = (jnp.zeros((1, out_pad), jnp.float32)
              .at[:, :dim].set(params["regressor"]["b"]))
    flat += [rw_pad, rb_pad]

    # --- BlockSpecs: x/out blocked per batch, weights resident across the grid ---
    in_specs = [pl.BlockSpec((None, T, Din), lambda b: (b, 0, 0))]
    in_specs += [pl.BlockSpec(a.shape, lambda b: (0, 0)) for a in flat[1:]]
    out_specs = pl.BlockSpec((None, 1, out_pad), lambda b: (b, 0, 0))

    # --- cost estimate (post tap-fusion) -----------------------------------------
    flops = 2 * B * T * Din * H
    transc = 0
    for blk_p in plan:
        ci, co = blk_p["in_ch"], blk_p["out_ch"]
        flops += 2 * B * T * (_K * ci) * co + 2 * B * T * (_K * co) * co
        if blk_p["has_proj"]:
            flops += 2 * B * T * ci * co
        transc += 2 * B * T * (ci + co)            # exp + reciprocal per GELU element
    flops += 2 * B * Co * out_pad
    bytes_accessed = sum(int(a.size) * a.dtype.itemsize for a in flat) \
        + B * out_pad * 4

    kernel = functools.partial(_fsnet_kernel,
                               dilations=tuple(dilations),
                               has_proj=tuple(has_proj))
    out = pl.pallas_call(
        kernel,
        out_shape=jax.ShapeDtypeStruct((B, 1, out_pad), jnp.float32),
        grid=(B,),
        in_specs=in_specs,
        out_specs=out_specs,
        compiler_params=pltpu.CompilerParams(
            dimension_semantics=("parallel",),          # shard batch across TCs (v7x)
            vmem_limit_bytes=48 * 1024 * 1024),         # headroom incl. v7x's 64 MiB
        cost_estimate=pl.CostEstimate(flops=int(flops),
                                      transcendentals=int(transc),
                                      bytes_accessed=int(bytes_accessed)),
    )(*flat)

    pred = out[:, 0, :dim].reshape(B, args["pred_len"], -1)
    return {"pred": pred}


# ----------------------------------------------------------------------------
if __name__ == "__main__":
    args = dict(
        enc_in=4,            # -> input_dims = enc_in + 7 = 11
        enc_hidden_dim=32,
        enc_output_dim=32,
        depth=2,             # -> 3 conv blocks, dilations 1, 2, 4
        pred_len=4,
        c_out=3,
    )
    input_len = 16
    batch = 2

    key = jax.random.PRNGKey(0)
    kp, kx = jax.random.split(key)
    params = init_params(kp, args)
    x = jax.random.normal(kx, (batch, input_len, args["enc_in"] + 7), jnp.float32)

    fwd = jax.jit(functools.partial(model_forward, args=args))
    out = fwd(params, x)
    pred = jax.block_until_ready(out["pred"])
    assert pred.shape == (batch, args["pred_len"], args["c_out"]), pred.shape
    assert bool(jnp.all(jnp.isfinite(pred)))
    print("KERNEL_OK")
</pallas_src>

<mosaic_0001>
module attributes {stable_mosaic.version = 11 : i64} {
  func.func @_fsnet_kernel(%arg0: i32, %arg1: memref<1x16x11xf32, #tpu.memory_space<vmem>>, %arg2: memref<11x32xbf16, #tpu.memory_space<vmem>>, %arg3: memref<1x32xf32, #tpu.memory_space<vmem>>, %arg4: memref<96x32xbf16, #tpu.memory_space<vmem>>, %arg5: memref<1x32xf32, #tpu.memory_space<vmem>>, %arg6: memref<96x32xbf16, #tpu.memory_space<vmem>>, %arg7: memref<1x32xf32, #tpu.memory_space<vmem>>, %arg8: memref<96x32xbf16, #tpu.memory_space<vmem>>, %arg9: memref<1x32xf32, #tpu.memory_space<vmem>>, %arg10: memref<96x32xbf16, #tpu.memory_space<vmem>>, %arg11: memref<1x32xf32, #tpu.memory_space<vmem>>, %arg12: memref<96x32xbf16, #tpu.memory_space<vmem>>, %arg13: memref<1x32xf32, #tpu.memory_space<vmem>>, %arg14: memref<96x32xbf16, #tpu.memory_space<vmem>>, %arg15: memref<1x32xf32, #tpu.memory_space<vmem>>, %arg16: memref<32x32xbf16, #tpu.memory_space<vmem>>, %arg17: memref<1x32xf32, #tpu.memory_space<vmem>>, %arg18: memref<32x128xbf16, #tpu.memory_space<vmem>>, %arg19: memref<1x128xf32, #tpu.memory_space<vmem>>, %arg20: memref<1x1x128xf32, #tpu.memory_space<vmem>>) attributes {dimension_semantics = [#tpu.dimension_semantics<parallel>], iteration_bounds = array<i64: 2>, scalar_prefetch = 0 : i64, scratch_operands = 0 : i64, tpu.core_type = #tpu.core_type<tc>, window_params = [{transform_indices = @transform_0, window_bounds = array<i64: 1, 16, 11>}, {pipeline_mode = #tpu.pipeline_mode<synchronous>, transform_indices = @transform_1, window_bounds = array<i64: 11, 32>}, {pipeline_mode = #tpu.pipeline_mode<synchronous>, transform_indices = @transform_2, window_bounds = array<i64: 1, 32>}, {pipeline_mode = #tpu.pipeline_mode<synchronous>, transform_indices = @transform_3, window_bounds = array<i64: 96, 32>}, {pipeline_mode = #tpu.pipeline_mode<synchronous>, transform_indices = @transform_4, window_bounds = array<i64: 1, 32>}, {pipeline_mode = #tpu.pipeline_mode<synchronous>, transform_indices = @transform_5, window_bounds = array<i64: 96, 32>}, {pipeline_mode = #tpu.pipeline_mode<synchronous>, transform_indices = @transform_6, window_bounds = array<i64: 1, 32>}, {pipeline_mode = #tpu.pipeline_mode<synchronous>, transform_indices = @transform_7, window_bounds = array<i64: 96, 32>}, {pipeline_mode = #tpu.pipeline_mode<synchronous>, transform_indices = @transform_8, window_bounds = array<i64: 1, 32>}, {pipeline_mode = #tpu.pipeline_mode<synchronous>, transform_indices = @transform_9, window_bounds = array<i64: 96, 32>}, {pipeline_mode = #tpu.pipeline_mode<synchronous>, transform_indices = @transform_10, window_bounds = array<i64: 1, 32>}, {pipeline_mode = #tpu.pipeline_mode<synchronous>, transform_indices = @transform_11, window_bounds = array<i64: 96, 32>}, {pipeline_mode = #tpu.pipeline_mode<synchronous>, transform_indices = @transform_12, window_bounds = array<i64: 1, 32>}, {pipeline_mode = #tpu.pipeline_mode<synchronous>, transform_indices = @transform_13, window_bounds = array<i64: 96, 32>}, {pipeline_mode = #tpu.pipeline_mode<synchronous>, transform_indices = @transform_14, window_bounds = array<i64: 1, 32>}, {pipeline_mode = #tpu.pipeline_mode<synchronous>, transform_indices = @transform_15, window_bounds = array<i64: 32, 32>}, {pipeline_mode = #tpu.pipeline_mode<synchronous>, transform_indices = @transform_16, window_bounds = array<i64: 1, 32>}, {pipeline_mode = #tpu.pipeline_mode<synchronous>, transform_indices = @transform_17, window_bounds = array<i64: 32, 128>}, {pipeline_mode = #tpu.pipeline_mode<synchronous>, transform_indices = @transform_18, window_bounds = array<i64: 1, 128>}, {transform_indices = @transform_19, window_bounds = array<i64: 1, 1, 128>}]} {
    %c0 = arith.constant 0 : index
    %c0_0 = arith.constant 0 : index
    %c0_1 = arith.constant 0 : index
    %0 = vector.load %arg1[%c0, %c0_0, %c0_1] : memref<1x16x11xf32, #tpu.memory_space<vmem>>, vector<1x16x11xf32>
    %1 = vector.shape_cast %0 : vector<1x16x11xf32> to vector<16x11xf32>
    %2 = arith.cmpf one, %1, %1 : vector<16x11xf32>
    %cst = arith.constant 1.000000e+00 : f32
    %cst_2 = arith.constant 0.000000e+00 : f32
    %3 = vector.broadcast %cst : f32 to vector<16x11xf32>
    %4 = vector.broadcast %cst_2 : f32 to vector<16x11xf32>
    %5 = arith.select %2, %3, %4 : vector<16x11xi1>, vector<16x11xf32>
    %cst_3 = arith.constant dense<0xFF800000> : vector<16xf32>
    %6 = vector.multi_reduction <maximumf>, %5, %cst_3 [1] : vector<16x11xf32> to vector<16xf32>
    %7 = vector.shape_cast %6 : vector<16xf32> to vector<16x1xf32>
    %cst_4 = arith.constant 0.000000e+00 : f32
    %8 = vector.broadcast %cst_4 : f32 to vector<16x1xf32>
    %9 = arith.cmpf ogt, %7, %8 : vector<16x1xf32>
    %cst_5 = arith.constant 0.000000e+00 : f32
    %10 = vector.shape_cast %9 : vector<16x1xi1> to vector<16x1xi1>
    %11 = vector.broadcast %10 : vector<16x1xi1> to vector<16x11xi1>
    %12 = vector.broadcast %cst_5 : f32 to vector<16x11xf32>
    %13 = arith.select %11, %12, %1 : vector<16x11xi1>, vector<16x11xf32>
    %14 = arith.truncf %13 : vector<16x11xf32> to vector<16x11xbf16>
    %c0_6 = arith.constant 0 : index
    %c0_7 = arith.constant 0 : index
    %15 = vector.load %arg2[%c0_6, %c0_7] : memref<11x32xbf16, #tpu.memory_space<vmem>>, vector<11x32xbf16>
    %cst_8 = arith.constant dense<0.000000e+00> : vector<16x32xf32>
    %16 = tpu.matmul %14, %15, %cst_8 {dimension_numbers = #tpu.dot_dimension_numbers<[1], [0], [0], [1], [0, 0, 1, 1], [], []>} : vector<16x11xbf16>, vector<11x32xbf16>, vector<16x32xf32> -> vector<16x32xf32>
    %c0_9 = arith.constant 0 : index
    %c0_10 = arith.constant 0 : index
    %17 = vector.load %arg3[%c0_9, %c0_10] : memref<1x32xf32, #tpu.memory_space<vmem>>, vector<1x32xf32>
    %18 = vector.broadcast %17 : vector<1x32xf32> to vector<16x32xf32>
    %19 = arith.addf %16, %18 : vector<16x32xf32>
    %cst_11 = arith.constant 0.000000e+00 : f32
    %20 = vector.broadcast %cst_11 : f32 to vector<16x1xf32>
    %21 = arith.cmpf ogt, %7, %20 : vector<16x1xf32>
    %cst_12 = arith.constant 0.000000e+00 : f32
    %22 = vector.shape_cast %21 : vector<16x1xi1> to vector<16x1xi1>
    %23 = vector.broadcast %22 : vector<16x1xi1> to vector<16x32xi1>
    %24 = vector.broadcast %cst_12 : f32 to vector<16x32xf32>
    %25 = arith.select %23, %24, %19 : vector<16x32xi1>, vector<16x32xf32>
    %cst_13 = arith.constant 5.000000e-01 : f32
    %26 = vector.broadcast %cst_13 : f32 to vector<16x32xf32>
    %27 = arith.mulf %26, %25 : vector<16x32xf32>
    %cst_14 = arith.constant 0.707106769 : f32
    %28 = vector.broadcast %cst_14 : f32 to vector<16x32xf32>
    %29 = arith.mulf %25, %28 : vector<16x32xf32>
    %cst_15 = arith.constant 0.000000e+00 : f32
    %30 = vector.broadcast %cst_15 : f32 to vector<16x32xf32>
    %31 = arith.cmpf oge, %29, %30 : vector<16x32xf32>
    %cst_16 = arith.constant 1.000000e+00 : f32
    %cst_17 = arith.constant -1.000000e+00 : f32
    %32 = vector.broadcast %cst_16 : f32 to vector<16x32xf32>
    %33 = vector.broadcast %cst_17 : f32 to vector<16x32xf32>
    %34 = arith.select %31, %32, %33 : vector<16x32xi1>, vector<16x32xf32>
    %35 = math.absf %29 : vector<16x32xf32>
    %cst_18 = arith.constant 0.327591091 : f32
    %36 = vector.broadcast %cst_18 : f32 to vector<16x32xf32>
    %37 = arith.mulf %36, %35 : vector<16x32xf32>
    %cst_19 = arith.constant 1.000000e+00 : f32
    %38 = vector.broadcast %cst_19 : f32 to vector<16x32xf32>
    %39 = arith.addf %38, %37 : vector<16x32xf32>
    %40 = tpu.reciprocal %39 {approx = true} : vector<16x32xf32> -> vector<16x32xf32>
    %cst_20 = arith.constant 1.06140542 : f32
    %41 = vector.broadcast %cst_20 : f32 to vector<16x32xf32>
    %42 = arith.mulf %41, %40 : vector<16x32xf32>
    %cst_21 = arith.constant -1.45315206 : f32
    %43 = vector.broadcast %cst_21 : f32 to vector<16x32xf32>
    %44 = arith.addf %42, %43 : vector<16x32xf32>
    %45 = arith.mulf %44, %40 : vector<16x32xf32>
    %cst_22 = arith.constant 1.42141378 : f32
    %46 = vector.broadcast %cst_22 : f32 to vector<16x32xf32>
    %47 = arith.addf %45, %46 : vector<16x32xf32>
    %48 = arith.mulf %47, %40 : vector<16x32xf32>
    %cst_23 = arith.constant -0.284496725 : f32
    %49 = vector.broadcast %cst_23 : f32 to vector<16x32xf32>
    %50 = arith.addf %48, %49 : vector<16x32xf32>
    %51 = arith.mulf %50, %40 : vector<16x32xf32>
    %cst_24 = arith.constant 0.254829586 : f32
    %52 = vector.broadcast %cst_24 : f32 to vector<16x32xf32>
    %53 = arith.addf %51, %52 : vector<16x32xf32>
    %54 = arith.mulf %53, %40 : vector<16x32xf32>
    %cst_25 = arith.constant 0.000000e+00 : f32
    %55 = vector.broadcast %cst_25 : f32 to vector<16x32xf32>
    %56 = arith.subf %55, %35 : vector<16x32xf32>
    %57 = arith.mulf %56, %35 : vector<16x32xf32>
    %58 = math.exp %57 : vector<16x32xf32>
    %59 = arith.mulf %54, %58 : vector<16x32xf32>
    %cst_26 = arith.constant 1.000000e+00 : f32
    %60 = vector.broadcast %cst_26 : f32 to vector<16x32xf32>
    %61 = arith.subf %60, %59 : vector<16x32xf32>
    %62 = arith.mulf %34, %61 : vector<16x32xf32>
    %cst_27 = arith.constant 1.000000e+00 : f32
    %63 = vector.broadcast %cst_27 : f32 to vector<16x32xf32>
    %64 = arith.addf %63, %62 : vector<16x32xf32>
    %65 = arith.mulf %27, %64 : vector<16x32xf32>
    %cst_28 = arith.constant 0.000000e+00 : f32
    %66 = vector.broadcast %cst_28 : f32 to vector<1x32xf32>
    %67 = vector.extract_strided_slice %65 {offsets = [0, 0], sizes = [15, 32], strides = [1, 1]} : vector<16x32xf32> to vector<15x32xf32>
    %68 = tpu.concatenate %66, %67 in 0 : vector<1x32xf32>, vector<15x32xf32> -> vector<16x32xf32>
    %69 = vector.extract_strided_slice %65 {offsets = [1, 0], sizes = [15, 32], strides = [1, 1]} : vector<16x32xf32> to vector<15x32xf32>
    %70 = tpu.concatenate %69, %66 in 0 : vector<15x32xf32>, vector<1x32xf32> -> vector<16x32xf32>
    %71 = tpu.concatenate %68, %65, %70 in 1 : vector<16x32xf32>, vector<16x32xf32>, vector<16x32xf32> -> vector<16x96xf32>
    %72 = arith.truncf %71 : vector<16x96xf32> to vector<16x96xbf16>
    %c0_29 = arith.constant 0 : index
    %c0_30 = arith.constant 0 : index
    %73 = vector.load %arg4[%c0_29, %c0_30] : memref<96x32xbf16, #tpu.memory_space<vmem>>, vector<96x32xbf16>
    %cst_31 = arith.constant dense<0.000000e+00> : vector<16x32xf32>
    %74 = tpu.matmul %72, %73, %cst_31 {dimension_numbers = #tpu.dot_dimension_numbers<[1], [0], [0], [1], [0, 0, 1, 1], [], []>} : vector<16x96xbf16>, vector<96x32xbf16>, vector<16x32xf32> -> vector<16x32xf32>
    %c0_32 = arith.constant 0 : index
    %c0_33 = arith.constant 0 : index
    %75 = vector.load %arg5[%c0_32, %c0_33] : memref<1x32xf32, #tpu.memory_space<vmem>>, vector<1x32xf32>
    %76 = vector.broadcast %75 : vector<1x32xf32> to vector<16x32xf32>
    %77 = arith.addf %74, %76 : vector<16x32xf32>
    %cst_34 = arith.constant 5.000000e-01 : f32
    %78 = vector.broadcast %cst_34 : f32 to vector<16x32xf32>
    %79 = arith.mulf %78, %77 : vector<16x32xf32>
    %cst_35 = arith.constant 0.707106769 : f32
    %80 = vector.broadcast %cst_35 : f32 to vector<16x32xf32>
    %81 = arith.mulf %77, %80 : vector<16x32xf32>
    %cst_36 = arith.constant 0.000000e+00 : f32
    %82 = vector.broadcast %cst_36 : f32 to vector<16x32xf32>
    %83 = arith.cmpf oge, %81, %82 : vector<16x32xf32>
    %cst_37 = arith.constant 1.000000e+00 : f32
    %cst_38 = arith.constant -1.000000e+00 : f32
    %84 = vector.broadcast %cst_37 : f32 to vector<16x32xf32>
    %85 = vector.broadcast %cst_38 : f32 to vector<16x32xf32>
    %86 = arith.select %83, %84, %85 : vector<16x32xi1>, vector<16x32xf32>
    %87 = math.absf %81 : vector<16x32xf32>
    %cst_39 = arith.constant 0.327591091 : f32
    %88 = vector.broadcast %cst_39 : f32 to vector<16x32xf32>
    %89 = arith.mulf %88, %87 : vector<16x32xf32>
    %cst_40 = arith.constant 1.000000e+00 : f32
    %90 = vector.broadcast %cst_40 : f32 to vector<16x32xf32>
    %91 = arith.addf %90, %89 : vector<16x32xf32>
    %92 = tpu.reciprocal %91 {approx = true} : vector<16x32xf32> -> vector<16x32xf32>
    %cst_41 = arith.constant 1.06140542 : f32
    %93 = vector.broadcast %cst_41 : f32 to vector<16x32xf32>
    %94 = arith.mulf %93, %92 : vector<16x32xf32>
    %cst_42 = arith.constant -1.45315206 : f32
    %95 = vector.broadcast %cst_42 : f32 to vector<16x32xf32>
    %96 = arith.addf %94, %95 : vector<16x32xf32>
    %97 = arith.mulf %96, %92 : vector<16x32xf32>
    %cst_43 = arith.constant 1.42141378 : f32
    %98 = vector.broadcast %cst_43 : f32 to vector<16x32xf32>
    %99 = arith.addf %97, %98 : vector<16x32xf32>
    %100 = arith.mulf %99, %92 : vector<16x32xf32>
    %cst_44 = arith.constant -0.284496725 : f32
    %101 = vector.broadcast %cst_44 : f32 to vector<16x32xf32>
    %102 = arith.addf %100, %101 : vector<16x32xf32>
    %103 = arith.mulf %102, %92 : vector<16x32xf32>
    %cst_45 = arith.constant 0.254829586 : f32
    %104 = vector.broadcast %cst_45 : f32 to vector<16x32xf32>
    %105 = arith.addf %103, %104 : vector<16x32xf32>
    %106 = arith.mulf %105, %92 : vector<16x32xf32>
    %cst_46 = arith.constant 0.000000e+00 : f32
    %107 = vector.broadcast %cst_46 : f32 to vector<16x32xf32>
    %108 = arith.subf %107, %87 : vector<16x32xf32>
    %109 = arith.mulf %108, %87 : vector<16x32xf32>
    %110 = math.exp %109 : vector<16x32xf32>
    %111 = arith.mulf %106, %110 : vector<16x32xf32>
    %cst_47 = arith.constant 1.000000e+00 : f32
    %112 = vector.broadcast %cst_47 : f32 to vector<16x32xf32>
    %113 = arith.subf %112, %111 : vector<16x32xf32>
    %114 = arith.mulf %86, %113 : vector<16x32xf32>
    %cst_48 = arith.constant 1.000000e+00 : f32
    %115 = vector.broadcast %cst_48 : f32 to vector<16x32xf32>
    %116 = arith.addf %115, %114 : vector<16x32xf32>
    %117 = arith.mulf %79, %116 : vector<16x32xf32>
    %cst_49 = arith.constant 0.000000e+00 : f32
    %118 = vector.broadcast %cst_49 : f32 to vector<1x32xf32>
    %119 = vector.extract_strided_slice %117 {offsets = [0, 0], sizes = [15, 32], strides = [1, 1]} : vector<16x32xf32> to vector<15x32xf32>
    %120 = tpu.concatenate %118, %119 in 0 : vector<1x32xf32>, vector<15x32xf32> -> vector<16x32xf32>
    %121 = vector.extract_strided_slice %117 {offsets = [1, 0], sizes = [15, 32], strides = [1, 1]} : vector<16x32xf32> to vector<15x32xf32>
    %122 = tpu.concatenate %121, %118 in 0 : vector<15x32xf32>, vector<1x32xf32> -> vector<16x32xf32>
    %123 = tpu.concatenate %120, %117, %122 in 1 : vector<16x32xf32>, vector<16x32xf32>, vector<16x32xf32> -> vector<16x96xf32>
    %124 = arith.truncf %123 : vector<16x96xf32> to vector<16x96xbf16>
    %c0_50 = arith.constant 0 : index
    %c0_51 = arith.constant 0 : index
    %125 = vector.load %arg6[%c0_50, %c0_51] : memref<96x32xbf16, #tpu.memory_space<vmem>>, vector<96x32xbf16>
    %cst_52 = arith.constant dense<0.000000e+00> : vector<16x32xf32>
    %126 = tpu.matmul %124, %125, %cst_52 {dimension_numbers = #tpu.dot_dimension_numbers<[1], [0], [0], [1], [0, 0, 1, 1], [], []>} : vector<16x96xbf16>, vector<96x32xbf16>, vector<16x32xf32> -> vector<16x32xf32>
    %c0_53 = arith.constant 0 : index
    %c0_54 = arith.constant 0 : index
    %127 = vector.load %arg7[%c0_53, %c0_54] : memref<1x32xf32, #tpu.memory_space<vmem>>, vector<1x32xf32>
    %128 = vector.broadcast %127 : vector<1x32xf32> to vector<16x32xf32>
    %129 = arith.addf %126, %128 : vector<16x32xf32>
    %130 = arith.addf %129, %25 : vector<16x32xf32>
    %cst_55 = arith.constant 5.000000e-01 : f32
    %131 = vector.broadcast %cst_55 : f32 to vector<16x32xf32>
    %132 = arith.mulf %131, %130 : vector<16x32xf32>
    %cst_56 = arith.constant 0.707106769 : f32
    %133 = vector.broadcast %cst_56 : f32 to vector<16x32xf32>
    %134 = arith.mulf %130, %133 : vector<16x32xf32>
    %cst_57 = arith.constant 0.000000e+00 : f32
    %135 = vector.broadcast %cst_57 : f32 to vector<16x32xf32>
    %136 = arith.cmpf oge, %134, %135 : vector<16x32xf32>
    %cst_58 = arith.constant 1.000000e+00 : f32
    %cst_59 = arith.constant -1.000000e+00 : f32
    %137 = vector.broadcast %cst_58 : f32 to vector<16x32xf32>
    %138 = vector.broadcast %cst_59 : f32 to vector<16x32xf32>
    %139 = arith.select %136, %137, %138 : vector<16x32xi1>, vector<16x32xf32>
    %140 = math.absf %134 : vector<16x32xf32>
    %cst_60 = arith.constant 0.327591091 : f32
    %141 = vector.broadcast %cst_60 : f32 to vector<16x32xf32>
    %142 = arith.mulf %141, %140 : vector<16x32xf32>
    %cst_61 = arith.constant 1.000000e+00 : f32
    %143 = vector.broadcast %cst_61 : f32 to vector<16x32xf32>
    %144 = arith.addf %143, %142 : vector<16x32xf32>
    %145 = tpu.reciprocal %144 {approx = true} : vector<16x32xf32> -> vector<16x32xf32>
    %cst_62 = arith.constant 1.06140542 : f32
    %146 = vector.broadcast %cst_62 : f32 to vector<16x32xf32>
    %147 = arith.mulf %146, %145 : vector<16x32xf32>
    %cst_63 = arith.constant -1.45315206 : f32
    %148 = vector.broadcast %cst_63 : f32 to vector<16x32xf32>
    %149 = arith.addf %147, %148 : vector<16x32xf32>
    %150 = arith.mulf %149, %145 : vector<16x32xf32>
    %cst_64 = arith.constant 1.42141378 : f32
    %151 = vector.broadcast %cst_64 : f32 to vector<16x32xf32>
    %152 = arith.addf %150, %151 : vector<16x32xf32>
    %153 = arith.mulf %152, %145 : vector<16x32xf32>
    %cst_65 = arith.constant -0.284496725 : f32
    %154 = vector.broadcast %cst_65 : f32 to vector<16x32xf32>
    %155 = arith.addf %153, %154 : vector<16x32xf32>
    %156 = arith.mulf %155, %145 : vector<16x32xf32>
    %cst_66 = arith.constant 0.254829586 : f32
    %157 = vector.broadcast %cst_66 : f32 to vector<16x32xf32>
    %158 = arith.addf %156, %157 : vector<16x32xf32>
    %159 = arith.mulf %158, %145 : vector<16x32xf32>
    %cst_67 = arith.constant 0.000000e+00 : f32
    %160 = vector.broadcast %cst_67 : f32 to vector<16x32xf32>
    %161 = arith.subf %160, %140 : vector<16x32xf32>
    %162 = arith.mulf %161, %140 : vector<16x32xf32>
    %163 = math.exp %162 : vector<16x32xf32>
    %164 = arith.mulf %159, %163 : vector<16x32xf32>
    %cst_68 = arith.constant 1.000000e+00 : f32
    %165 = vector.broadcast %cst_68 : f32 to vector<16x32xf32>
    %166 = arith.subf %165, %164 : vector<16x32xf32>
    %167 = arith.mulf %139, %166 : vector<16x32xf32>
    %cst_69 = arith.constant 1.000000e+00 : f32
    %168 = vector.broadcast %cst_69 : f32 to vector<16x32xf32>
    %169 = arith.addf %168, %167 : vector<16x32xf32>
    %170 = arith.mulf %132, %169 : vector<16x32xf32>
    %cst_70 = arith.constant 0.000000e+00 : f32
    %171 = vector.broadcast %cst_70 : f32 to vector<2x32xf32>
    %172 = vector.extract_strided_slice %170 {offsets = [0, 0], sizes = [14, 32], strides = [1, 1]} : vector<16x32xf32> to vector<14x32xf32>
    %173 = tpu.concatenate %171, %172 in 0 : vector<2x32xf32>, vector<14x32xf32> -> vector<16x32xf32>
    %174 = vector.extract_strided_slice %170 {offsets = [2, 0], sizes = [14, 32], strides = [1, 1]} : vector<16x32xf32> to vector<14x32xf32>
    %175 = tpu.concatenate %174, %171 in 0 : vector<14x32xf32>, vector<2x32xf32> -> vector<16x32xf32>
    %176 = tpu.concatenate %173, %170, %175 in 1 : vector<16x32xf32>, vector<16x32xf32>, vector<16x32xf32> -> vector<16x96xf32>
    %177 = arith.truncf %176 : vector<16x96xf32> to vector<16x96xbf16>
    %c0_71 = arith.constant 0 : index
    %c0_72 = arith.constant 0 : index
    %178 = vector.load %arg8[%c0_71, %c0_72] : memref<96x32xbf16, #tpu.memory_space<vmem>>, vector<96x32xbf16>
    %cst_73 = arith.constant dense<0.000000e+00> : vector<16x32xf32>
    %179 = tpu.matmul %177, %178, %cst_73 {dimension_numbers = #tpu.dot_dimension_numbers<[1], [0], [0], [1], [0, 0, 1, 1], [], []>} : vector<16x96xbf16>, vector<96x32xbf16>, vector<16x32xf32> -> vector<16x32xf32>
    %c0_74 = arith.constant 0 : index
    %c0_75 = arith.constant 0 : index
    %180 = vector.load %arg9[%c0_74, %c0_75] : memref<1x32xf32, #tpu.memory_space<vmem>>, vector<1x32xf32>
    %181 = vector.broadcast %180 : vector<1x32xf32> to vector<16x32xf32>
    %182 = arith.addf %179, %181 : vector<16x32xf32>
    %cst_76 = arith.constant 5.000000e-01 : f32
    %183 = vector.broadcast %cst_76 : f32 to vector<16x32xf32>
    %184 = arith.mulf %183, %182 : vector<16x32xf32>
    %cst_77 = arith.constant 0.707106769 : f32
    %185 = vector.broadcast %cst_77 : f32 to vector<16x32xf32>
    %186 = arith.mulf %182, %185 : vector<16x32xf32>
    %cst_78 = arith.constant 0.000000e+00 : f32
    %187 = vector.broadcast %cst_78 : f32 to vector<16x32xf32>
    %188 = arith.cmpf oge, %186, %187 : vector<16x32xf32>
    %cst_79 = arith.constant 1.000000e+00 : f32
    %cst_80 = arith.constant -1.000000e+00 : f32
    %189 = vector.broadcast %cst_79 : f32 to vector<16x32xf32>
    %190 = vector.broadcast %cst_80 : f32 to vector<16x32xf32>
    %191 = arith.select %188, %189, %190 : vector<16x32xi1>, vector<16x32xf32>
    %192 = math.absf %186 : vector<16x32xf32>
    %cst_81 = arith.constant 0.327591091 : f32
    %193 = vector.broadcast %cst_81 : f32 to vector<16x32xf32>
    %194 = arith.mulf %193, %192 : vector<16x32xf32>
    %cst_82 = arith.constant 1.000000e+00 : f32
    %195 = vector.broadcast %cst_82 : f32 to vector<16x32xf32>
    %196 = arith.addf %195, %194 : vector<16x32xf32>
    %197 = tpu.reciprocal %196 {approx = true} : vector<16x32xf32> -> vector<16x32xf32>
    %cst_83 = arith.constant 1.06140542 : f32
    %198 = vector.broadcast %cst_83 : f32 to vector<16x32xf32>
    %199 = arith.mulf %198, %197 : vector<16x32xf32>
    %cst_84 = arith.constant -1.45315206 : f32
    %200 = vector.broadcast %cst_84 : f32 to vector<16x32xf32>
    %201 = arith.addf %199, %200 : vector<16x32xf32>
    %202 = arith.mulf %201, %197 : vector<16x32xf32>
    %cst_85 = arith.constant 1.42141378 : f32
    %203 = vector.broadcast %cst_85 : f32 to vector<16x32xf32>
    %204 = arith.addf %202, %203 : vector<16x32xf32>
    %205 = arith.mulf %204, %197 : vector<16x32xf32>
    %cst_86 = arith.constant -0.284496725 : f32
    %206 = vector.broadcast %cst_86 : f32 to vector<16x32xf32>
    %207 = arith.addf %205, %206 : vector<16x32xf32>
    %208 = arith.mulf %207, %197 : vector<16x32xf32>
    %cst_87 = arith.constant 0.254829586 : f32
    %209 = vector.broadcast %cst_87 : f32 to vector<16x32xf32>
    %210 = arith.addf %208, %209 : vector<16x32xf32>
    %211 = arith.mulf %210, %197 : vector<16x32xf32>
    %cst_88 = arith.constant 0.000000e+00 : f32
    %212 = vector.broadcast %cst_88 : f32 to vector<16x32xf32>
    %213 = arith.subf %212, %192 : vector<16x32xf32>
    %214 = arith.mulf %213, %192 : vector<16x32xf32>
    %215 = math.exp %214 : vector<16x32xf32>
    %216 = arith.mulf %211, %215 : vector<16x32xf32>
    %cst_89 = arith.constant 1.000000e+00 : f32
    %217 = vector.broadcast %cst_89 : f32 to vector<16x32xf32>
    %218 = arith.subf %217, %216 : vector<16x32xf32>
    %219 = arith.mulf %191, %218 : vector<16x32xf32>
    %cst_90 = arith.constant 1.000000e+00 : f32
    %220 = vector.broadcast %cst_90 : f32 to vector<16x32xf32>
    %221 = arith.addf %220, %219 : vector<16x32xf32>
    %222 = arith.mulf %184, %221 : vector<16x32xf32>
    %cst_91 = arith.constant 0.000000e+00 : f32
    %223 = vector.broadcast %cst_91 : f32 to vector<2x32xf32>
    %224 = vector.extract_strided_slice %222 {offsets = [0, 0], sizes = [14, 32], strides = [1, 1]} : vector<16x32xf32> to vector<14x32xf32>
    %225 = tpu.concatenate %223, %224 in 0 : vector<2x32xf32>, vector<14x32xf32> -> vector<16x32xf32>
    %226 = vector.extract_strided_slice %222 {offsets = [2, 0], sizes = [14, 32], strides = [1, 1]} : vector<16x32xf32> to vector<14x32xf32>
    %227 = tpu.concatenate %226, %223 in 0 : vector<14x32xf32>, vector<2x32xf32> -> vector<16x32xf32>
    %228 = tpu.concatenate %225, %222, %227 in 1 : vector<16x32xf32>, vector<16x32xf32>, vector<16x32xf32> -> vector<16x96xf32>
    %229 = arith.truncf %228 : vector<16x96xf32> to vector<16x96xbf16>
    %c0_92 = arith.constant 0 : index
    %c0_93 = arith.constant 0 : index
    %230 = vector.load %arg10[%c0_92, %c0_93] : memref<96x32xbf16, #tpu.memory_space<vmem>>, vector<96x32xbf16>
    %cst_94 = arith.constant dense<0.000000e+00> : vector<16x32xf32>
    %231 = tpu.matmul %229, %230, %cst_94 {dimension_numbers = #tpu.dot_dimension_numbers<[1], [0], [0], [1], [0, 0, 1, 1], [], []>} : vector<16x96xbf16>, vector<96x32xbf16>, vector<16x32xf32> -> vector<16x32xf32>
    %c0_95 = arith.constant 0 : index
    %c0_96 = arith.constant 0 : index
    %232 = vector.load %arg11[%c0_95, %c0_96] : memref<1x32xf32, #tpu.memory_space<vmem>>, vector<1x32xf32>
    %233 = vector.broadcast %232 : vector<1x32xf32> to vector<16x32xf32>
    %234 = arith.addf %231, %233 : vector<16x32xf32>
    %235 = arith.addf %234, %130 : vector<16x32xf32>
    %236 = arith.truncf %235 : vector<16x32xf32> to vector<16x32xbf16>
    %c0_97 = arith.constant 0 : index
    %c0_98 = arith.constant 0 : index
    %237 = vector.load %arg16[%c0_97, %c0_98] : memref<32x32xbf16, #tpu.memory_space<vmem>>, vector<32x32xbf16>
    %cst_99 = arith.constant dense<0.000000e+00> : vector<16x32xf32>
    %238 = tpu.matmul %236, %237, %cst_99 {dimension_numbers = #tpu.dot_dimension_numbers<[1], [0], [0], [1], [0, 0, 1, 1], [], []>} : vector<16x32xbf16>, vector<32x32xbf16>, vector<16x32xf32> -> vector<16x32xf32>
    %c0_100 = arith.constant 0 : index
    %c0_101 = arith.constant 0 : index
    %239 = vector.load %arg17[%c0_100, %c0_101] : memref<1x32xf32, #tpu.memory_space<vmem>>, vector<1x32xf32>
    %240 = vector.broadcast %239 : vector<1x32xf32> to vector<16x32xf32>
    %241 = arith.addf %238, %240 : vector<16x32xf32>
    %cst_102 = arith.constant 5.000000e-01 : f32
    %242 = vector.broadcast %cst_102 : f32 to vector<16x32xf32>
    %243 = arith.mulf %242, %235 : vector<16x32xf32>
    %cst_103 = arith.constant 0.707106769 : f32
    %244 = vector.broadcast %cst_103 : f32 to vector<16x32xf32>
    %245 = arith.mulf %235, %244 : vector<16x32xf32>
    %cst_104 = arith.constant 0.000000e+00 : f32
    %246 = vector.broadcast %cst_104 : f32 to vector<16x32xf32>
    %247 = arith.cmpf oge, %245, %246 : vector<16x32xf32>
    %cst_105 = arith.constant 1.000000e+00 : f32
    %cst_106 = arith.constant -1.000000e+00 : f32
    %248 = vector.broadcast %cst_105 : f32 to vector<16x32xf32>
    %249 = vector.broadcast %cst_106 : f32 to vector<16x32xf32>
    %250 = arith.select %247, %248, %249 : vector<16x32xi1>, vector<16x32xf32>
    %251 = math.absf %245 : vector<16x32xf32>
    %cst_107 = arith.constant 0.327591091 : f32
    %252 = vector.broadcast %cst_107 : f32 to vector<16x32xf32>
    %253 = arith.mulf %252, %251 : vector<16x32xf32>
    %cst_108 = arith.constant 1.000000e+00 : f32
    %254 = vector.broadcast %cst_108 : f32 to vector<16x32xf32>
    %255 = arith.addf %254, %253 : vector<16x32xf32>
    %256 = tpu.reciprocal %255 {approx = true} : vector<16x32xf32> -> vector<16x32xf32>
    %cst_109 = arith.constant 1.06140542 : f32
    %257 = vector.broadcast %cst_109 : f32 to vector<16x32xf32>
    %258 = arith.mulf %257, %256 : vector<16x32xf32>
    %cst_110 = arith.constant -1.45315206 : f32
    %259 = vector.broadcast %cst_110 : f32 to vector<16x32xf32>
    %260 = arith.addf %258, %259 : vector<16x32xf32>
    %261 = arith.mulf %260, %256 : vector<16x32xf32>
    %cst_111 = arith.constant 1.42141378 : f32
    %262 = vector.broadcast %cst_111 : f32 to vector<16x32xf32>
    %263 = arith.addf %261, %262 : vector<16x32xf32>
    %264 = arith.mulf %263, %256 : vector<16x32xf32>
    %cst_112 = arith.constant -0.284496725 : f32
    %265 = vector.broadcast %cst_112 : f32 to vector<16x32xf32>
    %266 = arith.addf %264, %265 : vector<16x32xf32>
    %267 = arith.mulf %266, %256 : vector<16x32xf32>
    %cst_113 = arith.constant 0.254829586 : f32
    %268 = vector.broadcast %cst_113 : f32 to vector<16x32xf32>
    %269 = arith.addf %267, %268 : vector<16x32xf32>
    %270 = arith.mulf %269, %256 : vector<16x32xf32>
    %cst_114 = arith.constant 0.000000e+00 : f32
    %271 = vector.broadcast %cst_114 : f32 to vector<16x32xf32>
    %272 = arith.subf %271, %251 : vector<16x32xf32>
    %273 = arith.mulf %272, %251 : vector<16x32xf32>
    %274 = math.exp %273 : vector<16x32xf32>
    %275 = arith.mulf %270, %274 : vector<16x32xf32>
    %cst_115 = arith.constant 1.000000e+00 : f32
    %276 = vector.broadcast %cst_115 : f32 to vector<16x32xf32>
    %277 = arith.subf %276, %275 : vector<16x32xf32>
    %278 = arith.mulf %250, %277 : vector<16x32xf32>
    %cst_116 = arith.constant 1.000000e+00 : f32
    %279 = vector.broadcast %cst_116 : f32 to vector<16x32xf32>
    %280 = arith.addf %279, %278 : vector<16x32xf32>
    %281 = arith.mulf %243, %280 : vector<16x32xf32>
    %cst_117 = arith.constant 0.000000e+00 : f32
    %282 = vector.broadcast %cst_117 : f32 to vector<4x32xf32>
    %283 = vector.extract_strided_slice %281 {offsets = [0, 0], sizes = [12, 32], strides = [1, 1]} : vector<16x32xf32> to vector<12x32xf32>
    %284 = tpu.concatenate %282, %283 in 0 : vector<4x32xf32>, vector<12x32xf32> -> vector<16x32xf32>
    %285 = vector.extract_strided_slice %281 {offsets = [4, 0], sizes = [12, 32], strides = [1, 1]} : vector<16x32xf32> to vector<12x32xf32>
    %286 = tpu.concatenate %285, %282 in 0 : vector<12x32xf32>, vector<4x32xf32> -> vector<16x32xf32>
    %287 = tpu.concatenate %284, %281, %286 in 1 : vector<16x32xf32>, vector<16x32xf32>, vector<16x32xf32> -> vector<16x96xf32>
    %288 = arith.truncf %287 : vector<16x96xf32> to vector<16x96xbf16>
    %c0_118 = arith.constant 0 : index
    %c0_119 = arith.constant 0 : index
    %289 = vector.load %arg12[%c0_118, %c0_119] : memref<96x32xbf16, #tpu.memory_space<vmem>>, vector<96x32xbf16>
    %cst_120 = arith.constant dense<0.000000e+00> : vector<16x32xf32>
    %290 = tpu.matmul %288, %289, %cst_120 {dimension_numbers = #tpu.dot_dimension_numbers<[1], [0], [0], [1], [0, 0, 1, 1], [], []>} : vector<16x96xbf16>, vector<96x32xbf16>, vector<16x32xf32> -> vector<16x32xf32>
    %c0_121 = arith.constant 0 : index
    %c0_122 = arith.constant 0 : index
    %291 = vector.load %arg13[%c0_121, %c0_122] : memref<1x32xf32, #tpu.memory_space<vmem>>, vector<1x32xf32>
    %292 = vector.broadcast %291 : vector<1x32xf32> to vector<16x32xf32>
    %293 = arith.addf %290, %292 : vector<16x32xf32>
    %cst_123 = arith.constant 5.000000e-01 : f32
    %294 = vector.broadcast %cst_123 : f32 to vector<16x32xf32>
    %295 = arith.mulf %294, %293 : vector<16x32xf32>
    %cst_124 = arith.constant 0.707106769 : f32
    %296 = vector.broadcast %cst_124 : f32 to vector<16x32xf32>
    %297 = arith.mulf %293, %296 : vector<16x32xf32>
    %cst_125 = arith.constant 0.000000e+00 : f32
    %298 = vector.broadcast %cst_125 : f32 to vector<16x32xf32>
    %299 = arith.cmpf oge, %297, %298 : vector<16x32xf32>
    %cst_126 = arith.constant 1.000000e+00 : f32
    %cst_127 = arith.constant -1.000000e+00 : f32
    %300 = vector.broadcast %cst_126 : f32 to vector<16x32xf32>
    %301 = vector.broadcast %cst_127 : f32 to vector<16x32xf32>
    %302 = arith.select %299, %300, %301 : vector<16x32xi1>, vector<16x32xf32>
    %303 = math.absf %297 : vector<16x32xf32>
    %cst_128 = arith.constant 0.327591091 : f32
    %304 = vector.broadcast %cst_128 : f32 to vector<16x32xf32>
    %305 = arith.mulf %304, %303 : vector<16x32xf32>
    %cst_129 = arith.constant 1.000000e+00 : f32
    %306 = vector.broadcast %cst_129 : f32 to vector<16x32xf32>
    %307 = arith.addf %306, %305 : vector<16x32xf32>
    %308 = tpu.reciprocal %307 {approx = true} : vector<16x32xf32> -> vector<16x32xf32>
    %cst_130 = arith.constant 1.06140542 : f32
    %309 = vector.broadcast %cst_130 : f32 to vector<16x32xf32>
    %310 = arith.mulf %309, %308 : vector<16x32xf32>
    %cst_131 = arith.constant -1.45315206 : f32
    %311 = vector.broadcast %cst_131 : f32 to vector<16x32xf32>
    %312 = arith.addf %310, %311 : vector<16x32xf32>
    %313 = arith.mulf %312, %308 : vector<16x32xf32>
    %cst_132 = arith.constant 1.42141378 : f32
    %314 = vector.broadcast %cst_132 : f32 to vector<16x32xf32>
    %315 = arith.addf %313, %314 : vector<16x32xf32>
    %316 = arith.mulf %315, %308 : vector<16x32xf32>
    %cst_133 = arith.constant -0.284496725 : f32
    %317 = vector.broadcast %cst_133 : f32 to vector<16x32xf32>
    %318 = arith.addf %316, %317 : vector<16x32xf32>
    %319 = arith.mulf %318, %308 : vector<16x32xf32>
    %cst_134 = arith.constant 0.254829586 : f32
    %320 = vector.broadcast %cst_134 : f32 to vector<16x32xf32>
    %321 = arith.addf %319, %320 : vector<16x32xf32>
    %322 = arith.mulf %321, %308 : vector<16x32xf32>
    %cst_135 = arith.constant 0.000000e+00 : f32
    %323 = vector.broadcast %cst_135 : f32 to vector<16x32xf32>
    %324 = arith.subf %323, %303 : vector<16x32xf32>
    %325 = arith.mulf %324, %303 : vector<16x32xf32>
    %326 = math.exp %325 : vector<16x32xf32>
    %327 = arith.mulf %322, %326 : vector<16x32xf32>
    %cst_136 = arith.constant 1.000000e+00 : f32
    %328 = vector.broadcast %cst_136 : f32 to vector<16x32xf32>
    %329 = arith.subf %328, %327 : vector<16x32xf32>
    %330 = arith.mulf %302, %329 : vector<16x32xf32>
    %cst_137 = arith.constant 1.000000e+00 : f32
    %331 = vector.broadcast %cst_137 : f32 to vector<16x32xf32>
    %332 = arith.addf %331, %330 : vector<16x32xf32>
    %333 = arith.mulf %295, %332 : vector<16x32xf32>
    %cst_138 = arith.constant 0.000000e+00 : f32
    %334 = vector.broadcast %cst_138 : f32 to vector<4x32xf32>
    %335 = vector.extract_strided_slice %333 {offsets = [0, 0], sizes = [12, 32], strides = [1, 1]} : vector<16x32xf32> to vector<12x32xf32>
    %336 = tpu.concatenate %334, %335 in 0 : vector<4x32xf32>, vector<12x32xf32> -> vector<16x32xf32>
    %337 = vector.extract_strided_slice %333 {offsets = [4, 0], sizes = [12, 32], strides = [1, 1]} : vector<16x32xf32> to vector<12x32xf32>
    %338 = tpu.concatenate %337, %334 in 0 : vector<12x32xf32>, vector<4x32xf32> -> vector<16x32xf32>
    %339 = tpu.concatenate %336, %333, %338 in 1 : vector<16x32xf32>, vector<16x32xf32>, vector<16x32xf32> -> vector<16x96xf32>
    %340 = arith.truncf %339 : vector<16x96xf32> to vector<16x96xbf16>
    %c0_139 = arith.constant 0 : index
    %c0_140 = arith.constant 0 : index
    %341 = vector.load %arg14[%c0_139, %c0_140] : memref<96x32xbf16, #tpu.memory_space<vmem>>, vector<96x32xbf16>
    %cst_141 = arith.constant dense<0.000000e+00> : vector<16x32xf32>
    %342 = tpu.matmul %340, %341, %cst_141 {dimension_numbers = #tpu.dot_dimension_numbers<[1], [0], [0], [1], [0, 0, 1, 1], [], []>} : vector<16x96xbf16>, vector<96x32xbf16>, vector<16x32xf32> -> vector<16x32xf32>
    %c0_142 = arith.constant 0 : index
    %c0_143 = arith.constant 0 : index
    %343 = vector.load %arg15[%c0_142, %c0_143] : memref<1x32xf32, #tpu.memory_space<vmem>>, vector<1x32xf32>
    %344 = vector.broadcast %343 : vector<1x32xf32> to vector<16x32xf32>
    %345 = arith.addf %342, %344 : vector<16x32xf32>
    %346 = arith.addf %345, %241 : vector<16x32xf32>
    %347 = vector.extract_strided_slice %346 {offsets = [15, 0], sizes = [1, 32], strides = [1, 1]} : vector<16x32xf32> to vector<1x32xf32>
    %348 = arith.truncf %347 : vector<1x32xf32> to vector<1x32xbf16>
    %c0_144 = arith.constant 0 : index
    %c0_145 = arith.constant 0 : index
    %349 = vector.load %arg18[%c0_144, %c0_145] : memref<32x128xbf16, #tpu.memory_space<vmem>>, vector<32x128xbf16>
    %cst_146 = arith.constant dense<0.000000e+00> : vector<1x128xf32>
    %350 = tpu.matmul %348, %349, %cst_146 {dimension_numbers = #tpu.dot_dimension_numbers<[1], [0], [0], [1], [0, 0, 1, 1], [], []>} : vector<1x32xbf16>, vector<32x128xbf16>, vector<1x128xf32> -> vector<1x128xf32>
    %c0_147 = arith.constant 0 : index
    %c0_148 = arith.constant 0 : index
    %351 = vector.load %arg19[%c0_147, %c0_148] : memref<1x128xf32, #tpu.memory_space<vmem>>, vector<1x128xf32>
    %352 = arith.addf %350, %351 : vector<1x128xf32>
    %c0_149 = arith.constant 0 : index
    %c0_150 = arith.constant 0 : index
    %c0_151 = arith.constant 0 : index
    %353 = vector.load %arg20[%c0_149, %c0_150, %c0_151] : memref<1x1x128xf32, #tpu.memory_space<vmem>>, vector<1x1x128xf32>
    %354 = vector.shape_cast %353 : vector<1x1x128xf32> to vector<1x128xf32>
    %355 = vector.shape_cast %352 : vector<1x128xf32> to vector<1x1x128xf32>
    tpu.vector_store %arg20[%c0_149, %c0_150, %c0_151], %355 {strides = array<i32>} : memref<1x1x128xf32, #tpu.memory_space<vmem>>, vector<1x1x128xf32>,
    return
  }
  func.func @transform_0(%arg0: i32) -> (i32, i32, i32) {
    %c0_i32 = arith.constant 0 : i32
    %c0_i32_0 = arith.constant 0 : i32
    %c0_i32_1 = arith.constant 0 : i32
    return %arg0, %c0_i32, %c0_i32_0 : i32, i32, i32
  }
  func.func @transform_1(%arg0: i32) -> (i32, i32) {
    %c0_i32 = arith.constant 0 : i32
    %c0_i32_0 = arith.constant 0 : i32
    %c0_i32_1 = arith.constant 0 : i32
    return %c0_i32, %c0_i32_0 : i32, i32
  }
  func.func @transform_2(%arg0: i32) -> (i32, i32) {
    %c0_i32 = arith.constant 0 : i32
    %c0_i32_0 = arith.constant 0 : i32
    %c0_i32_1 = arith.constant 0 : i32
    return %c0_i32, %c0_i32_0 : i32, i32
  }
  func.func @transform_3(%arg0: i32) -> (i32, i32) {
    %c0_i32 = arith.constant 0 : i32
    %c0_i32_0 = arith.constant 0 : i32
    %c0_i32_1 = arith.constant 0 : i32
    return %c0_i32, %c0_i32_0 : i32, i32
  }
  func.func @transform_4(%arg0: i32) -> (i32, i32) {
    %c0_i32 = arith.constant 0 : i32
    %c0_i32_0 = arith.constant 0 : i32
    %c0_i32_1 = arith.constant 0 : i32
    return %c0_i32, %c0_i32_0 : i32, i32
  }
  func.func @transform_5(%arg0: i32) -> (i32, i32) {
    %c0_i32 = arith.constant 0 : i32
    %c0_i32_0 = arith.constant 0 : i32
    %c0_i32_1 = arith.constant 0 : i32
    return %c0_i32, %c0_i32_0 : i32, i32
  }
  func.func @transform_6(%arg0: i32) -> (i32, i32) {
    %c0_i32 = arith.constant 0 : i32
    %c0_i32_0 = arith.constant 0 : i32
    %c0_i32_1 = arith.constant 0 : i32
    return %c0_i32, %c0_i32_0 : i32, i32
  }
  func.func @transform_7(%arg0: i32) -> (i32, i32) {
    %c0_i32 = arith.constant 0 : i32
    %c0_i32_0 = arith.constant 0 : i32
    %c0_i32_1 = arith.constant 0 : i32
    return %c0_i32, %c0_i32_0 : i32, i32
  }
  func.func @transform_8(%arg0: i32) -> (i32, i32) {
    %c0_i32 = arith.constant 0 : i32
    %c0_i32_0 = arith.constant 0 : i32
    %c0_i32_1 = arith.constant 0 : i32
    return %c0_i32, %c0_i32_0 : i32, i32
  }
  func.func @transform_9(%arg0: i32) -> (i32, i32) {
    %c0_i32 = arith.constant 0 : i32
    %c0_i32_0 = arith.constant 0 : i32
    %c0_i32_1 = arith.constant 0 : i32
    return %c0_i32, %c0_i32_0 : i32, i32
  }
  func.func @transform_10(%arg0: i32) -> (i32, i32) {
    %c0_i32 = arith.constant 0 : i32
    %c0_i32_0 = arith.constant 0 : i32
    %c0_i32_1 = arith.constant 0 : i32
    return %c0_i32, %c0_i32_0 : i32, i32
  }
  func.func @transform_11(%arg0: i32) -> (i32, i32) {
    %c0_i32 = arith.constant 0 : i32
    %c0_i32_0 = arith.constant 0 : i32
    %c0_i32_1 = arith.constant 0 : i32
    return %c0_i32, %c0_i32_0 : i32, i32
  }
  func.func @transform_12(%arg0: i32) -> (i32, i32) {
    %c0_i32 = arith.constant 0 : i32
    %c0_i32_0 = arith.constant 0 : i32
    %c0_i32_1 = arith.constant 0 : i32
    return %c0_i32, %c0_i32_0 : i32, i32
  }
  func.func @transform_13(%arg0: i32) -> (i32, i32) {
    %c0_i32 = arith.constant 0 : i32
    %c0_i32_0 = arith.constant 0 : i32
    %c0_i32_1 = arith.constant 0 : i32
    return %c0_i32, %c0_i32_0 : i32, i32
  }
  func.func @transform_14(%arg0: i32) -> (i32, i32) {
    %c0_i32 = arith.constant 0 : i32
    %c0_i32_0 = arith.constant 0 : i32
    %c0_i32_1 = arith.constant 0 : i32
    return %c0_i32, %c0_i32_0 : i32, i32
  }
  func.func @transform_15(%arg0: i32) -> (i32, i32) {
    %c0_i32 = arith.constant 0 : i32
    %c0_i32_0 = arith.constant 0 : i32
    %c0_i32_1 = arith.constant 0 : i32
    return %c0_i32, %c0_i32_0 : i32, i32
  }
  func.func @transform_16(%arg0: i32) -> (i32, i32) {
    %c0_i32 = arith.constant 0 : i32
    %c0_i32_0 = arith.constant 0 : i32
    %c0_i32_1 = arith.constant 0 : i32
    return %c0_i32, %c0_i32_0 : i32, i32
  }
  func.func @transform_17(%arg0: i32) -> (i32, i32) {
    %c0_i32 = arith.constant 0 : i32
    %c0_i32_0 = arith.constant 0 : i32
    %c0_i32_1 = arith.constant 0 : i32
    return %c0_i32, %c0_i32_0 : i32, i32
  }
  func.func @transform_18(%arg0: i32) -> (i32, i32) {
    %c0_i32 = arith.constant 0 : i32
    %c0_i32_0 = arith.constant 0 : i32
    %c0_i32_1 = arith.constant 0 : i32
    return %c0_i32, %c0_i32_0 : i32, i32
  }
  func.func @transform_19(%arg0: i32) -> (i32, i32, i32) {
    %c0_i32 = arith.constant 0 : i32
    %c0_i32_0 = arith.constant 0 : i32
    %c0_i32_1 = arith.constant 0 : i32
    return %arg0, %c0_i32, %c0_i32_0 : i32, i32, i32
  }
}

</mosaic_0001>

<bundles_post_ra>
// kernel: squeeze.1
= control target key start
LH: loop header
LB: loop body
LE: loop exit
PB: predicated region body
PF: predicated region fallthrough
CT: control target
= control target key end

     0   :  { %s43_s8 = smov 119   ;;  %vm7_vm0 = vcmask 23552   ;;  %s44_s9 = smov 122   ;;  %s64_s0 = inlined_call_operand.vmem [shape: f32[2,12], index: 0, kind: input, shape index: {}]   ;;  %s65_s1 = inlined_call_operand.vmem [shape: f32[2,4,3], index: 1, kind: output, shape index: {}]  }
   0x1   :  { %v4_v0 = vld [vmem:[%s64_s0] sm:$0x3]  ;;  %s42_s0 = smov 125  }
   0x2   :  { %5 = vst [vmem:[#allocation1] sm:$0x3] %v4_v0 }
   0x9   :  { %v9_v1 = vld [vmem:[#allocation1] sm:$0x3]  }
   0xa   :  { %v21_v2 = vld [vmem:[#allocation1] sm:$0x3]   ;;  %10 = vrot.lane.b32.xlu0 %v9_v1, %s42_s0 }
   0xb   :  { %22 = vrot.lane.b32.xlu1 %v21_v2, %s43_s8  ;;  %v6_v3 = vld [vmem:[#allocation1] sm:$0x3]  }
   0xc   :  { %v15_v4 = vld [vmem:[#allocation1] sm:$0x3]   ;;  %8 = vst.msk [vmem:[#allocation0] ss:$8 sm:$0x3] %vm7_vm0, %v6_v3  }
   0xe   :  { %16 = vrot.lane.b32.xlu0 %v15_v4, %s44_s9 }
  0x7c   :  { %v11_v5 = vpop.permute.xlu0 %10  }
  0x7d   :  { %v23_v6 = vpop.permute.xlu1 %22   ;;  %14 = vst.msk [vmem:[#allocation0 + $0x1] ss:$8 sm:$0x3] %vm7_vm0, %v11_v5  }
  0x7e   :  { %26 = vst.msk [vmem:[#allocation0 + $0x3] ss:$8 sm:$0x3] %vm7_vm0, %v23_v6  }
  0x80   :  { %v17_v7 = vpop.permute.xlu0 %16  }
  0x81   :  { %20 = vst.msk [vmem:[#allocation0 + $0x2] ss:$8 sm:$0x3] %vm7_vm0, %v17_v7  }
  0x88   :  { %v30_v8 = vld [vmem:[#allocation0] sm:$0xf]  ;;  %v34_v9 = vld [vmem:[#allocation0 + $0x8] sm:$0xf] }
  0x89   :  { %32 = vst [vmem:[%s65_s1] sm:$0xf] %v30_v8  ;;  %38 = vst [vmem:[%s65_s1 + $0x4] sm:$0xf] %v34_v9 }

// kernel: model_forward.1
= control target key start
LH: loop header
LB: loop body
LE: loop exit
PB: predicated region body
PF: predicated region fallthrough
CT: control target
= control target key end

     0   :  { %s2823_s0 = inlined_call_operand.vmem [shape: f32[2,16,11], index: 0, kind: input, shape index: {}]   ;;  %s2824_s1 = inlined_call_operand.vmem [shape: bf16[11,32], index: 1, kind: input, shape index: {}]   ;;  %s2825_s2 = inlined_call_operand.vmem [shape: f32[1,32], index: 2, kind: input, shape index: {}]   ;;  %s2826_s3 = inlined_call_operand.vmem [shape: bf16[96,32], index: 3, kind: input, shape index: {}]   ;;  %s2827_s4 = inlined_call_operand.vmem [shape: f32[1,32], index: 4, kind: input, shape index: {}]   ;;  %s2828_s5 = inlined_call_operand.vmem [shape: bf16[96,32], index: 5, kind: input, shape index: {}]   ;;  %s2829_s6 = inlined_call_operand.vmem [shape: f32[1,32], index: 6, kind: input, shape index: {}]   ;;  %s2830_s7 = inlined_call_operand.vmem [shape: bf16[96,32], index: 7, kind: input, shape index: {}]   ;;  %s2831_s8 = inlined_call_operand.vmem [shape: f32[1,32], index: 8, kind: input, shape index: {}]   ;;  %s2832_s9 = inlined_call_operand.vmem [shape: bf16[96,32], index: 9, kind: input, shape index: {}]   ;;  %s2833_s10 = inlined_call_operand.vmem [shape: f32[1,32], index: 10, kind: input, shape index: {}]   ;;  %s2834_s11 = inlined_call_operand.vmem [shape: bf16[96,32], index: 11, kind: input, shape index: {}]   ;;  %s2835_s12 = inlined_call_operand.vmem [shape: f32[1,32], index: 12, kind: input, shape index: {}]   ;;  %s2836_s13 = inlined_call_operand.vmem [shape: bf16[96,32], index: 13, kind: input, shape index: {}]   ;;  %s2837_s14 = inlined_call_operand.vmem [shape: f32[1,32], index: 14, kind: input, shape index: {}]   ;;  %s2838_s15 = inlined_call_operand.vmem [shape: bf16[32,32], index: 15, kind: input, shape index: {}]   ;;  %s2839_s16 = inlined_call_operand.vmem [shape: f32[1,32], index: 16, kind: input, shape index: {}]   ;;  %s2840_s17 = inlined_call_operand.vmem [shape: bf16[32,128], index: 17, kind: input, shape index: {}]   ;;  %s2841_s18 = inlined_call_operand.vmem [shape: f32[1,128], index: 18, kind: input, shape index: {}]   ;;  %s2842_s19 = inlined_call_operand.vmem [shape: f32[2,1,128], index: 19, kind: output, shape index: {}]  }
   0x1   :  { %2844 = sst [smem:[#allocation2_spill]] %s2823_s0  ;;  %s2485_s0 = smov 0  }
   0x2   :  { %2845 = sst [smem:[#allocation3_spill]] %s2824_s1 }
   0x3   :  { %2846 = sst [smem:[#allocation4_spill]] %s2825_s2 }
   0x4   :  { %2847 = sst [smem:[#allocation5_spill]] %s2826_s3 }
   0x5 LB: > { %s1966_s30 = sadd.s32 4294967295, %s2377_s0   ;;  %p1970_p0 = scmp.ge.s32.totalorder %s2377_s0, 1  ;;  %s2377_s0 = sphi %s2485_s0, %s29_s0  }
   0x6   : > { %p537_p1 = scmp.lt.s32.totalorder %s2377_s0, 3 }
   0x8   : > { %p538_p2 = pnand %p1970_p0, %p537_p1 }
   0x9   : > { %p591_p3 = scmp.lt.s32.totalorder (!%p538_p2), %s1966_s30, 1  ;;  %v2379_v0 = vmov (!%p538_p2), 0.0   ;;  %s2848_s22 = sld [smem:[#allocation2_spill]] (!%p538_p2)  ;;  %vm606_vm0 = vcmask (!%p538_p2), 89088   ;;  %vm639_vm3 = vcmask (!%p538_p2), 1044480   ;;  %vm640_vm4 = vcmask (!%p538_p2), 1045504  }
   0xa   : > { %541 = sbr.rel (%p538_p2) target bundleno = 2947 (0xb83), region = 96  ;;  %2084 = vmatprep.subr.bf16.mxu0 (!%p538_p2), %v2379_v0  ;;  %2090 = vmatprep.subr.bf16.mxu1 (!%p538_p2), %v2379_v0  ;;  %s2849_s25 = sld [smem:[#allocation3_spill]] (!%p538_p2)  ;;  %v2380_v8 = vmov (!%p538_p2), 65535   ;;  %vm2381_vm5 = vmmov (!%p538_p2), 0   ;;  %vm750_vm10 = vcmask (!%p538_p2), 1046528   ;;  %vm743_vm11 = vcmask (!%p538_p2), 1040384  }
   0xb   : > { %v641_v9 = vsel (!%p538_p2), %vm639_vm3, 4294967295, %v2380_v8  ;;  %2086 = vmatprep.mubr.msk.bf16.mxu0 (!%p538_p2), %vm2381_vm5, %v2379_v0  ;;  %2102 = vmatprep.mubr.msk.bf16.mxu1 (!%p538_p2), %vm2381_vm5, %v2379_v0  ;;  %s2850_s27 = sld [smem:[#allocation5_spill]] (!%p538_p2)  ;;  %s2851_s24 = sld [smem:[#allocation4_spill]] (!%p538_p2)  ;;  %vm769_vm12 = vcmask (!%p538_p2), 261120   ;;  %vm772_vm13 = vcmask (!%p538_p2), 523264   ;;  %vm831_vm14 = vcmask (!%p538_p2), 785408  }
   0xc   : > { %v642_v10 = vsel (!%p538_p2), %vm640_vm4, %v641_v9, 0  ;;  %s2383_s29 = smov (!%p538_p2), 32   ;;  %vm1114_vm3 = vcmask (!%p538_p2), 1041408  }
  0x10   : > { %v2282_v7 = vld [vmem:[%s2849_s25] sm:$0x3f] (!%p538_p2)  }
  0x11   : > { %s2853_s30 = smov (!%p591_p3, %s1966_s30), 1  ;;  %v644_v11 = vand.u32 %v2282_v7, %v642_v10  ;;  %v2283_v17 = vld [vmem:[%s2850_s27] sm:$0xff]   ;;  %v2284_v18 = vld [vmem:[%s2850_s27 + $0x8] sm:$0xff]   ;;  %v2285_v19 = vld [vmem:[%s2850_s27 + $0x10] sm:$0xff]  }
  0x12   : > { %s2033_s20 = sshll.u32 %s2853_s30, 4  ;;  %2091 = vmatpush3.bf16.msra.mxu1 %v2283_v17  ;;  %v2286_v20 = vld [vmem:[%s2850_s27 + $0x18] sm:$0xff]   ;;  %v1973_v21 = vld [vmem:[%s2851_s24] ss:$0 sm:$0xff] }
  0x13   : > { %s595_s2 = scalar_lea.vmem %s2848_s22, %s2033_s20  ;;  %2085 = vmatpush3.bf16.msra.mxu0 %v644_v11  ;;  %2092 = vmatprep.subr.bf16.mxu1 %v2379_v0  ;;  %s2384_s20 = smov 64  }
  0x14   : > { %v600_v1 = vld [vmem:[%s595_s2] sm:$0xff]  ;;  %v601_v2 = vld [vmem:[%s595_s2 + $0x8] sm:$0xff]  ;;  %2106 = vmatprep.subr.bf16.mxu0 %v2379_v0 }
  0x15   : > { %vm602_vm1 = vcmp.ne.f32.partialorder %v600_v1, %v600_v1  ;;  %vm603_vm2 = vcmp.ne.f32.partialorder %v601_v2, %v601_v2 }
  0x16   : > { %v604_v3 = vsel %vm602_vm1, 1.0, %v2379_v0  ;;  %v605_v4 = vsel %vm603_vm2, 1.0, %v2379_v0  ;;  %2093 = vmatpush3.bf16.msra.mxu1 %v2284_v18 }
  0x17   : > { %v607_v5 = vsel %vm606_vm0, %v604_v3, -inf  ;;  %v610_v6 = vsel %vm606_vm0, %v605_v4, -inf  ;;  %2094 = vmatprep.subr.bf16.mxu1 %v2379_v0 }
  0x18   : > { %608 = vmax.xlane.f32.xlu0 %v607_v5  ;;  %v2287_v5 = vld [vmem:[%s2850_s27 + $0x20] sm:$0xff]  }
  0x1a   : > { %2095 = vmatpush3.bf16.msra.mxu1 %v2285_v19 }
  0x1b   : > { %2096 = vmatprep.subr.bf16.mxu1 %v2379_v0 }
  0x1c   : > { %611 = vmax.xlane.f32.xlu0 %v610_v6  ;;  %v2382_v6 = vmov -1.0  }
  0x1e   : > { %2097 = vmatpush3.bf16.msra.mxu1 %v2286_v20 }
  0x1f   : > { %2098 = vmatprep.subr.bf16.mxu1 %v2379_v0 }
  0x22   : > { %2099 = vmatpush3.bf16.msra.mxu1 %v2287_v5 }
  0x23   : > { %2100 = vmatprep.subr.bf16.mxu1 %v2379_v0 }
  0xa5   : > { %v609_v12 = vpop.xlane.xlu0 %608 }
  0xa6   : > { %vm613_vm6 = vcmp.gt.f32.partialorder %v609_v12, 0.0 }
  0xa7   : > { %v619_v14 = vsel %vm613_vm6, 0.0, %v600_v1 }
  0xa9   : > { %v612_v13 = vpop.xlane.xlu0 %611 }
  0xaa   : > { %vm614_vm7 = vcmp.gt.f32.partialorder %v612_v13, 0.0 }
  0xab   : > { %v620_v15 = vsel %vm614_vm7, 0.0, %v601_v2 }
  0xac   : > { %v621_v16 = vpack.c.bf16 %v620_v15, %v619_v14  ;;  %v2288_v14 = vld [vmem:[%s2850_s27 + $0x28] sm:$0xff]  }
  0xad   : > { %2101 = vmatpush3.bf16.msra.mxu1 %v2288_v14 }
  0xae   : > { %2087 = vmatmul.mubr.msk.bf16.vlgmr.msra.gmra.mrb[0].mxu0 %vm606_vm0, %v621_v16  ;;  %2122 = vmatprep.subr.bf16.mxu1 %v2379_v0 }
  0xaf   : > { %2118 = vmatprep.mubr.msk.bf16.mxu0 %vm2381_vm5, %v2379_v0 }
 0x181   : > { %v680_v22 = vpop.f32.mrb[0].mxu0 }
 0x182   : > { %v681_v23 = vadd.f32 %v1973_v21, %v680_v22  ;;  %v2088_v24 = vpop.f32.mrb[1].mxu0 }
 0x183   : > { %v683_v25 = vpop.f32.mrb[2].mxu0 }
 0x184   : > { %v2539_v26 = vsel %vm613_vm6, 0.0, %v681_v23  ;;  %v684_v27 = vadd.f32 %v1973_v21, %v683_v25  ;;  %v2089_v28 = vpop.f32.mrb[3].mxu0 }
 0x185   : > { %v691_v29 = vmul.f32 0.70710677, %v2539_v26  ;;  %v689_v11 = vmul.f32 0.5, %v2539_v26 }
 0x186   : > { %v2543_v30 = vsel %vm614_vm7, 0.0, %v684_v27 }
 0x187   : > { %v697_v31 = vand.u32 2147483647, %v691_v29  ;;  %v692_v32 = vmul.f32 0.70710677, %v2543_v30  ;;  %vm693_vm8 = vcmp.ge.f32.partialorder %v691_v29, 0.0  ;;  %v690_v17 = vmul.f32 0.5, %v2543_v30 }
 0x188   : > { %v695_v7 = vsel %vm693_vm8, 1.0, %v2382_v6 }
 0x189   : > { %v699_v33 = vmul.f32 0.3275911, %v697_v31  ;;  %v698_v34 = vand.u32 2147483647, %v692_v32  ;;  %v723_v38 = vsub.f32 0.0, %v697_v31  ;;  %vm694_vm9 = vcmp.ge.f32.partialorder %v692_v32, 0.0 }
 0x18a   : > { %v696_v12 = vsel %vm694_vm9, 1.0, %v2382_v6  ;;  %vm1548_vm9 = vcmask 1043456  }
 0x18b   : > { %v701_v35 = vadd.f32 1.0, %v699_v33  ;;  %v700_v36 = vmul.f32 0.3275911, %v698_v34  ;;  %v724_v39 = vsub.f32 0.0, %v698_v34  ;;  %v725_v41 = vmul.f32 %v723_v38, %v697_v31 }
 0x18d   : > { %2323 = vrcp.f32 %v701_v35  ;;  %v702_v37 = vadd.f32 1.0, %v700_v36  ;;  %v726_v44 = vmul.f32 %v724_v39, %v698_v34  ;;  %v727_v46 = vmul.f32 1.442695, %v725_v41 }
 0x18f   : > { %2325 = vrcp.f32 %v702_v37  ;;  %v729_v50 = vmul.f32 1.442695, %v726_v44  ;;  %v2290_v44 = vld [vmem:[%s2828_s5 + $0x8] sm:$0xff]  }
 0x190   : > { %2327 = vpow2.f32 %v727_v46  ;;  %v2292_v46 = vld [vmem:[%s2828_s5 + $0x18] sm:$0xff]  }
 0x191   : > { %2329 = vpow2.f32 %v729_v50 }
 0x197   : > { %v2324_v40 = vpop.eup %2323 }
 0x198   : > { %v705_v42 = vmul.f32 1.0614054, %v2324_v40 }
 0x199   : > { %v2326_v43 = vpop.eup %2325 }
 0x19a   : > { %v707_v45 = vadd.f32 -1.4531521, %v705_v42  ;;  %v706_v47 = vmul.f32 1.0614054, %v2326_v43  ;;  %v2328_v62 = vpop.eup %2327 }
 0x19b   : > { %v2330_v3 = vpop.eup %2329 }
 0x19c   : > { %v709_v48 = vmul.f32 %v2324_v40, %v707_v45  ;;  %v708_v49 = vadd.f32 -1.4531521, %v706_v47  ;;  %v2291_v45 = vld [vmem:[%s2828_s5 + $0x10] sm:$0xff]   ;;  %v1976_v47 = vld [vmem:[%s2827_s4] ss:$0 sm:$0xff] }
 0x19e   : > { %v711_v51 = vadd.f32 1.4214138, %v709_v48  ;;  %v710_v52 = vmul.f32 %v2326_v43, %v708_v49 }
 0x1a0   : > { %v713_v53 = vmul.f32 %v2324_v40, %v711_v51  ;;  %v712_v54 = vadd.f32 1.4214138, %v710_v52 }
 0x1a2   : > { %v715_v55 = vadd.f32 -0.28449672, %v713_v53  ;;  %v714_v56 = vmul.f32 %v2326_v43, %v712_v54 }
 0x1a4   : > { %v717_v57 = vmul.f32 %v2324_v40, %v715_v55  ;;  %v716_v58 = vadd.f32 -0.28449672, %v714_v56 }
 0x1a6   : > { %v719_v59 = vadd.f32 0.2548296, %v717_v57  ;;  %v718_v60 = vmul.f32 %v2326_v43, %v716_v58 }
 0x1a8   : > { %v721_v61 = vmul.f32 %v2324_v40, %v719_v59  ;;  %v720_v63 = vadd.f32 0.2548296, %v718_v60 }
 0x1aa   : > { %v731_v1 = vmul.f32 %v2328_v62, %v721_v61  ;;  %v722_v2 = vmul.f32 %v2326_v43, %v720_v63  ;;  %v2289_v43 = vld [vmem:[%s2828_s5] sm:$0xff]  }
 0x1ab   : > { %2107 = vmatpush3.bf16.msra.mxu0 %v2289_v43 }
 0x1ac   : > { %v733_v4 = vsub.f32 1.0, %v731_v1  ;;  %v732_v8 = vmul.f32 %v2330_v3, %v722_v2  ;;  %2108 = vmatprep.subr.bf16.mxu0 %v2379_v0 }
 0x1ae   : > { %v735_v9 = vmul.f32 %v733_v4, %v695_v7  ;;  %v734_v10 = vsub.f32 1.0, %v732_v8 }
 0x1af   : > { %2109 = vmatpush3.bf16.msra.mxu0 %v2290_v44 }
 0x1b0   : > { %v737_v13 = vadd.f32 1.0, %v735_v9  ;;  %v736_v15 = vmul.f32 %v734_v10, %v696_v12  ;;  %2110 = vmatprep.subr.bf16.mxu0 %v2379_v0 }
 0x1b2   : > { %v739_v16 = vmul.f32 %v737_v13, %v689_v11  ;;  %v738_v18 = vadd.f32 1.0, %v736_v15 }
 0x1b3   : > { %2111 = vmatpush3.bf16.msra.mxu0 %v2291_v45 }
 0x1b4   : > { %v740_v19 = vmul.f32 %v738_v18, %v690_v17  ;;  %v751_v20 = vrot.slane %v739_v16, 1  ;;  %v744_v24 = vrot.slane %v739_v16, 7  ;;  %2112 = vmatprep.subr.bf16.mxu0 %v2379_v0 }
 0x1b6   : > { %v2222_v21 = vpack.i.bf16 %v740_v19, %v739_v16  ;;  %v745_v22 = vrot.slane %v740_v19, 7  ;;  %v752_v23 = vrot.slane %v740_v19, 1  ;;  %v749_v35 = vsel %vm743_vm11, 0.0, %v744_v24 }
 0x1b7   : > { %2113 = vmatpush3.bf16.msra.mxu0 %v2292_v46 }
 0x1b8   : > { %2223 = vrot.lane.b32.xlu1 %v2222_v21, %s2383_s29  ;;  %v753_v25 = vsel %vm750_vm10, %v751_v20, %v752_v23  ;;  %v755_v27 = vsel %vm750_vm10, %v752_v23, 0.0  ;;  %v746_v28 = vsel %vm743_vm11, %v744_v24, %v745_v22  ;;  %2114 = vmatprep.subr.bf16.mxu0 %v2379_v0 }
 0x1b9   : > { %v2227_v29 = vpack.i.bf16 %v755_v27, %v753_v25 }
 0x1bc   : > { %2228 = vrot.lane.b32.xlu1 %v2227_v29, %s2384_s20  ;;  %v2293_v29 = vld [vmem:[%s2828_s5 + $0x20] sm:$0xff]  }
 0x1bd   : > { %2115 = vmatpush3.bf16.msra.mxu0 %v2293_v29 }
 0x1be   : > { %2116 = vmatprep.subr.bf16.mxu0 %v2379_v0 }
 0x22a   : > { %v2224_v31 = vpop.permute.xlu1 %2223 }
 0x22b   : > { %v2226_v32 = vunpack.i.h.bf16 %v2224_v31  ;;  %v2225_v33 = vunpack.i.l.bf16 %v2224_v31 }
 0x22d   : > { %v770_v38 = vsel %vm769_vm12, %v749_v35, %v2225_v33  ;;  %v771_v39 = vsel %vm769_vm12, %v746_v28, %v2226_v32 }
 0x22e   : > { %v2229_v34 = vpop.permute.xlu1 %2228 }
 0x22f   : > { %v2231_v36 = vunpack.i.h.bf16 %v2229_v34  ;;  %v2230_v37 = vunpack.i.l.bf16 %v2229_v34 }
 0x231   : > { %v773_v40 = vsel %vm772_vm13, %v770_v38, %v2230_v37  ;;  %v774_v41 = vsel %vm772_vm13, %v771_v39, %v2231_v36  ;;  %v2294_v37 = vld [vmem:[%s2828_s5 + $0x28] sm:$0xff]  }
 0x232   : > { %v775_v42 = vpack.c.bf16 %v774_v41, %v773_v40  ;;  %2117 = vmatpush3.bf16.msra.mxu0 %v2294_v37 }
 0x233   : > { %2138 = vmatprep.subr.bf16.mxu0 %v2379_v0 }
 0x234   : > { %2103 = vmatmul.mubr.msk.bf16.vlgmr.msra.gmra.mrb[0].mxu1 %vm831_vm14, %v775_v42 }
 0x235   : > { %2134 = vmatprep.mubr.msk.bf16.mxu1 %vm2381_vm5, %v2379_v0 }
 0x307   : > { %v869_v48 = vpop.f32.mrb[0].mxu1 }
 0x308   : > { %v870_v49 = vadd.f32 %v1976_v47, %v869_v48  ;;  %v2104_v50 = vpop.f32.mrb[1].mxu1 }
 0x309   : > { %v872_v51 = vpop.f32.mrb[2].mxu1 }
 0x30a   : > { %v878_v52 = vmul.f32 0.70710677, %v870_v49  ;;  %v873_v53 = vadd.f32 %v1976_v47, %v872_v51  ;;  %v2105_v54 = vpop.f32.mrb[3].mxu1  ;;  %v876_v38 = vmul.f32 0.5, %v870_v49 }
 0x30c   : > { %v884_v55 = vand.u32 2147483647, %v878_v52  ;;  %v879_v56 = vmul.f32 0.70710677, %v873_v53  ;;  %vm880_vm15 = vcmp.ge.f32.partialorder %v878_v52, 0.0  ;;  %v877_v43 = vmul.f32 0.5, %v873_v53 }
 0x30d   : > { %v882_v33 = vsel %vm880_vm15, 1.0, %v2382_v6 }
 0x30e   : > { %v886_v57 = vmul.f32 0.3275911, %v884_v55  ;;  %v885_v58 = vand.u32 2147483647, %v879_v56  ;;  %v910_v62 = vsub.f32 0.0, %v884_v55  ;;  %vm881_vm0 = vcmp.ge.f32.partialorder %v879_v56, 0.0 }
 0x30f   : > { %v883_v40 = vsel %vm881_vm0, 1.0, %v2382_v6 }
 0x310   : > { %v888_v59 = vadd.f32 1.0, %v886_v57  ;;  %v887_v60 = vmul.f32 0.3275911, %v885_v58  ;;  %v911_v63 = vsub.f32 0.0, %v885_v58  ;;  %v912_v2 = vmul.f32 %v910_v62, %v884_v55 }
 0x312   : > { %2331 = vrcp.f32 %v888_v59  ;;  %v889_v61 = vadd.f32 1.0, %v887_v60  ;;  %v913_v7 = vmul.f32 %v911_v63, %v885_v58  ;;  %v914_v8 = vmul.f32 1.442695, %v912_v2 }
 0x314   : > { %2333 = vrcp.f32 %v889_v61  ;;  %v916_v13 = vmul.f32 1.442695, %v913_v7  ;;  %v2297_v7 = vld [vmem:[%s2830_s7 + $0x10] sm:$0xff]  }
 0x315   : > { %2335 = vpow2.f32 %v914_v8  ;;  %v2298_v8 = vld [vmem:[%s2830_s7 + $0x18] sm:$0xff]  }
 0x316   : > { %2337 = vpow2.f32 %v916_v13 }
 0x31c   : > { %v2332_v1 = vpop.eup %2331 }
 0x31d   : > { %v892_v3 = vmul.f32 1.0614054, %v2332_v1 }
 0x31e   : > { %v2334_v4 = vpop.eup %2333 }
 0x31f   : > { %v894_v5 = vadd.f32 -1.4531521, %v892_v3  ;;  %v893_v9 = vmul.f32 1.0614054, %v2334_v4  ;;  %v2336_v24 = vpop.eup %2335 }
 0x320   : > { %v2338_v31 = vpop.eup %2337 }
 0x321   : > { %v896_v10 = vmul.f32 %v2332_v1, %v894_v5  ;;  %v895_v11 = vadd.f32 -1.4531521, %v893_v9  ;;  %v2296_v5 = vld [vmem:[%s2830_s7 + $0x8] sm:$0xff]   ;;  %v1984_v9 = vld [vmem:[%s2829_s6] ss:$0 sm:$0xff] }
 0x323   : > { %v898_v12 = vadd.f32 1.4214138, %v896_v10  ;;  %v897_v14 = vmul.f32 %v2334_v4, %v895_v11 }
 0x325   : > { %v900_v15 = vmul.f32 %v2332_v1, %v898_v12  ;;  %v899_v16 = vadd.f32 1.4214138, %v897_v14 }
 0x327   : > { %v902_v17 = vadd.f32 -0.28449672, %v900_v15  ;;  %v901_v18 = vmul.f32 %v2334_v4, %v899_v16 }
 0x329   : > { %v904_v19 = vmul.f32 %v2332_v1, %v902_v17  ;;  %v903_v20 = vadd.f32 -0.28449672, %v901_v18 }
 0x32b   : > { %v906_v21 = vadd.f32 0.2548296, %v904_v19  ;;  %v905_v22 = vmul.f32 %v2334_v4, %v903_v20 }
 0x32d   : > { %v908_v23 = vmul.f32 %v2332_v1, %v906_v21  ;;  %v907_v25 = vadd.f32 0.2548296, %v905_v22 }
 0x32f   : > { %v918_v27 = vmul.f32 %v2336_v24, %v908_v23  ;;  %v909_v28 = vmul.f32 %v2334_v4, %v907_v25  ;;  %v2295_v4 = vld [vmem:[%s2830_s7] sm:$0xff]  }
 0x330   : > { %2123 = vmatpush3.bf16.msra.mxu1 %v2295_v4 }
 0x331   : > { %v920_v32 = vsub.f32 1.0, %v918_v27  ;;  %v919_v34 = vmul.f32 %v2338_v31, %v909_v28  ;;  %2124 = vmatprep.subr.bf16.mxu1 %v2379_v0 }
 0x333   : > { %v922_v35 = vmul.f32 %v920_v32, %v882_v33  ;;  %v921_v36 = vsub.f32 1.0, %v919_v34 }
 0x334   : > { %2125 = vmatpush3.bf16.msra.mxu1 %v2296_v5 }
 0x335   : > { %v924_v39 = vadd.f32 1.0, %v922_v35  ;;  %v923_v41 = vmul.f32 %v921_v36, %v883_v40  ;;  %2126 = vmatprep.subr.bf16.mxu1 %v2379_v0 }
 0x337   : > { %v926_v42 = vmul.f32 %v924_v39, %v876_v38  ;;  %v925_v44 = vadd.f32 1.0, %v923_v41 }
 0x338   : > { %2127 = vmatpush3.bf16.msra.mxu1 %v2297_v7 }
 0x339   : > { %v927_v45 = vmul.f32 %v925_v44, %v877_v43  ;;  %v930_v46 = vrot.slane %v926_v42, 7  ;;  %v936_v47 = vrot.slane %v926_v42, 1  ;;  %2128 = vmatprep.subr.bf16.mxu1 %v2379_v0 }
 0x33b   : > { %v931_v48 = vrot.slane %v927_v45, 7  ;;  %v2232_v50 = vpack.i.bf16 %v927_v45, %v926_v42  ;;  %v937_v51 = vrot.slane %v927_v45, 1  ;;  %v935_v59 = vsel %vm743_vm11, 0.0, %v930_v46 }
 0x33c   : > { %2129 = vmatpush3.bf16.msra.mxu1 %v2298_v8 }
 0x33d   : > { %2233 = vrot.lane.b32.xlu0 %v2232_v50, %s2383_s29  ;;  %v938_v49 = vsel %vm750_vm10, %v936_v47, %v937_v51  ;;  %v940_v52 = vsel %vm750_vm10, %v937_v51, 0.0  ;;  %v932_v54 = vsel %vm743_vm11, %v930_v46, %v931_v48  ;;  %2130 = vmatprep.subr.bf16.mxu1 %v2379_v0 }
 0x33e   : > { %v2237_v55 = vpack.i.bf16 %v940_v52, %v938_v49 }
 0x340   : > { %2238 = vrot.lane.b32.xlu1 %v2237_v55, %s2384_s20 }
 0x3af   : > { %v2234_v56 = vpop.permute.xlu0 %2233 }
 0x3b0   : > { %v2236_v53 = vunpack.i.h.bf16 %v2234_v56  ;;  %v2235_v57 = vunpack.i.l.bf16 %v2234_v56 }
 0x3b2   : > { %v2239_v58 = vpop.permute.xlu1 %2238  ;;  %v954_v62 = vsel %vm769_vm12, %v935_v59, %v2235_v57  ;;  %v955_v63 = vsel %vm769_vm12, %v932_v54, %v2236_v53  ;;  %v2299_v53 = vld [vmem:[%s2830_s7 + $0x20] sm:$0xff]  }
 0x3b3   : > { %v2241_v60 = vunpack.i.h.bf16 %v2239_v58  ;;  %v2240_v61 = vunpack.i.l.bf16 %v2239_v58  ;;  %2131 = vmatpush3.bf16.msra.mxu1 %v2299_v53 }
 0x3b4   : > { %2132 = vmatprep.subr.bf16.mxu1 %v2379_v0 }
 0x3b5   : > { %v956_v1 = vsel %vm772_vm13, %v954_v62, %v2240_v61  ;;  %v957_v2 = vsel %vm772_vm13, %v955_v63, %v2241_v60 }
 0x3b6   : > { %v958_v3 = vpack.c.bf16 %v957_v2, %v956_v1  ;;  %v2300_v1 = vld [vmem:[%s2830_s7 + $0x28] sm:$0xff]  }
 0x3b7   : > { %2133 = vmatpush3.bf16.msra.mxu1 %v2300_v1 }
 0x3b8   : > { %2119 = vmatmul.mubr.msk.bf16.vlgmr.msra.gmra.mrb[4].mxu0 %vm831_vm14, %v958_v3  ;;  %2154 = vmatprep.subr.bf16.mxu1 %v2379_v0 }
 0x3b9   : > { %2150 = vmatprep.mubr.msk.bf16.mxu0 %vm2381_vm5, %v2379_v0 }
 0x48b   : > { %v1051_v10 = vpop.f32.mrb[4].mxu0 }
 0x48c   : > { %v1052_v11 = vadd.f32 %v1984_v9, %v1051_v10  ;;  %v2120_v12 = vpop.f32.mrb[5].mxu0 }
 0x48d   : > { %v1054_v13 = vpop.f32.mrb[6].mxu0 }
 0x48e   : > { %v2633_v14 = vadd.f32 %v1052_v11, %v2539_v26  ;;  %v1055_v15 = vadd.f32 %v1984_v9, %v1054_v13  ;;  %v2121_v16 = vpop.f32.mrb[7].mxu0 }
 0x490   : > { %v1062_v17 = vmul.f32 0.70710677, %v2633_v14  ;;  %v2637_v18 = vadd.f32 %v1055_v15, %v2543_v30  ;;  %v1060_v61 = vmul.f32 0.5, %v2633_v14 }
 0x492   : > { %v1068_v19 = vand.u32 2147483647, %v1062_v17  ;;  %v1063_v20 = vmul.f32 0.70710677, %v2637_v18  ;;  %vm1064_vm1 = vcmp.ge.f32.partialorder %v1062_v17, 0.0  ;;  %v1061_v4 = vmul.f32 0.5, %v2637_v18 }
 0x493   : > { %v1066_v57 = vsel %vm1064_vm1, 1.0, %v2382_v6 }
 0x494   : > { %v1070_v21 = vmul.f32 0.3275911, %v1068_v19  ;;  %v1069_v22 = vand.u32 2147483647, %v1063_v20  ;;  %v1094_v27 = vsub.f32 0.0, %v1068_v19  ;;  %vm1065_vm2 = vcmp.ge.f32.partialorder %v1063_v20, 0.0 }
 0x495   : > { %v1067_v62 = vsel %vm1065_vm2, 1.0, %v2382_v6 }
 0x496   : > { %v1072_v23 = vadd.f32 1.0, %v1070_v21  ;;  %v1071_v24 = vmul.f32 0.3275911, %v1069_v22  ;;  %v1095_v26 = vsub.f32 0.0, %v1069_v22  ;;  %v1096_v29 = vmul.f32 %v1094_v27, %v1068_v19 }
 0x498   : > { %2339 = vrcp.f32 %v1072_v23  ;;  %v1073_v25 = vadd.f32 1.0, %v1071_v24  ;;  %v1097_v33 = vmul.f32 %v1095_v26, %v1069_v22  ;;  %v1098_v30 = vmul.f32 1.442695, %v1096_v29 }
 0x49a   : > { %2341 = vrcp.f32 %v1073_v25  ;;  %v1100_v38 = vmul.f32 1.442695, %v1097_v33  ;;  %v2302_v33 = vld [vmem:[%s2832_s9 + $0x8] sm:$0xff]  }
 0x49b   : > { %2343 = vpow2.f32 %v1098_v30  ;;  %v2304_v30 = vld [vmem:[%s2832_s9 + $0x18] sm:$0xff]  }
 0x49c   : > { %2345 = vpow2.f32 %v1100_v38 }
 0x4a2   : > { %v2340_v28 = vpop.eup %2339 }
 0x4a3   : > { %v1076_v31 = vmul.f32 1.0614054, %v2340_v28 }
 0x4a4   : > { %v2342_v32 = vpop.eup %2341 }
 0x4a5   : > { %v1078_v34 = vadd.f32 -1.4531521, %v1076_v31  ;;  %v1077_v35 = vmul.f32 1.0614054, %v2342_v32  ;;  %v2344_v51 = vpop.eup %2343 }
 0x4a6   : > { %v2346_v55 = vpop.eup %2345 }
 0x4a7   : > { %v1080_v36 = vmul.f32 %v2340_v28, %v1078_v34  ;;  %v1079_v37 = vadd.f32 -1.4531521, %v1077_v35  ;;  %v2303_v34 = vld [vmem:[%s2832_s9 + $0x10] sm:$0xff]   ;;  %v1992_v35 = vld [vmem:[%s2831_s8] ss:$0 sm:$0xff] }
 0x4a9   : > { %v1082_v39 = vadd.f32 1.4214138, %v1080_v36  ;;  %v1081_v40 = vmul.f32 %v2342_v32, %v1079_v37 }
 0x4ab   : > { %v1084_v41 = vmul.f32 %v2340_v28, %v1082_v39  ;;  %v1083_v42 = vadd.f32 1.4214138, %v1081_v40 }
 0x4ad   : > { %v1086_v43 = vadd.f32 -0.28449672, %v1084_v41  ;;  %v1085_v44 = vmul.f32 %v2342_v32, %v1083_v42 }
 0x4af   : > { %v1088_v45 = vmul.f32 %v2340_v28, %v1086_v43  ;;  %v1087_v46 = vadd.f32 -0.28449672, %v1085_v44 }
 0x4b1   : > { %v1090_v47 = vadd.f32 0.2548296, %v1088_v45  ;;  %v1089_v48 = vmul.f32 %v2342_v32, %v1087_v46 }
 0x4b3   : > { %v1092_v50 = vmul.f32 %v2340_v28, %v1090_v47  ;;  %v1091_v49 = vadd.f32 0.2548296, %v1089_v48 }
 0x4b5   : > { %v1102_v52 = vmul.f32 %v2344_v51, %v1092_v50  ;;  %v1093_v54 = vmul.f32 %v2342_v32, %v1091_v49  ;;  %v2301_v32 = vld [vmem:[%s2832_s9] sm:$0xff]  }
 0x4b6   : > { %2139 = vmatpush3.bf16.msra.mxu0 %v2301_v32 }
 0x4b7   : > { %v1104_v56 = vsub.f32 1.0, %v1102_v52  ;;  %v1103_v58 = vmul.f32 %v2346_v55, %v1093_v54  ;;  %2140 = vmatprep.subr.bf16.mxu0 %v2379_v0 }
 0x4b9   : > { %v1106_v59 = vmul.f32 %v1104_v56, %v1066_v57  ;;  %v1105_v60 = vsub.f32 1.0, %v1103_v58 }
 0x4ba   : > { %2141 = vmatpush3.bf16.msra.mxu0 %v2302_v33 }
 0x4bb   : > { %v1108_v63 = vadd.f32 1.0, %v1106_v59  ;;  %v1107_v2 = vmul.f32 %v1105_v60, %v1067_v62  ;;  %2142 = vmatprep.subr.bf16.mxu0 %v2379_v0 }
 0x4bd   : > { %v1110_v3 = vmul.f32 %v1108_v63, %v1060_v61  ;;  %v1109_v5 = vadd.f32 1.0, %v1107_v2 }
 0x4be   : > { %2143 = vmatpush3.bf16.msra.mxu0 %v2303_v34 }
 0x4bf   : > { %v1111_v7 = vmul.f32 %v1109_v5, %v1061_v4  ;;  %v1121_v8 = vrot.slane %v1110_v3, 2  ;;  %v1115_v11 = vrot.slane %v1110_v3, 6  ;;  %2144 = vmatprep.subr.bf16.mxu0 %v2379_v0 }
 0x4c1   : > { %v2242_v9 = vpack.i.bf16 %v1111_v7, %v1110_v3  ;;  %v1122_v10 = vrot.slane %v1111_v7, 2  ;;  %v1116_v12 = vrot.slane %v1111_v7, 6  ;;  %v1120_v23 = vsel %vm1114_vm3, 0.0, %v1115_v11 }
 0x4c2   : > { %2145 = vmatpush3.bf16.msra.mxu0 %v2304_v30 }
 0x4c3   : > { %2243 = vrot.lane.b32.xlu1 %v2242_v9, %s2383_s29  ;;  %v1123_v13 = vsel %vm640_vm4, %v1121_v8, %v1122_v10  ;;  %v1125_v15 = vsel %vm640_vm4, %v1122_v10, 0.0  ;;  %v1117_v16 = vsel %vm1114_vm3, %v1115_v11, %v1116_v12  ;;  %2146 = vmatprep.subr.bf16.mxu0 %v2379_v0 }
 0x4c4   : > { %v2247_v17 = vpack.i.bf16 %v1125_v15, %v1123_v13 }
 0x4c7   : > { %2248 = vrot.lane.b32.xlu1 %v2247_v17, %s2384_s20 }
 0x535   : > { %v2244_v19 = vpop.permute.xlu1 %2243 }
 0x536   : > { %v2246_v20 = vunpack.i.h.bf16 %v2244_v19  ;;  %v2245_v21 = vunpack.i.l.bf16 %v2244_v19 }
 0x538   : > { %v1139_v27 = vsel %vm769_vm12, %v1120_v23, %v2245_v21  ;;  %v1140_v26 = vsel %vm769_vm12, %v1117_v16, %v2246_v20  ;;  %v2305_v20 = vld [vmem:[%s2832_s9 + $0x20] sm:$0xff]  }
 0x539   : > { %v2249_v22 = vpop.permute.xlu1 %2248  ;;  %2147 = vmatpush3.bf16.msra.mxu0 %v2305_v20 }
 0x53a   : > { %v2251_v24 = vunpack.i.h.bf16 %v2249_v22  ;;  %v2250_v25 = vunpack.i.l.bf16 %v2249_v22  ;;  %2148 = vmatprep.subr.bf16.mxu0 %v2379_v0 }
 0x53c   : > { %v1141_v28 = vsel %vm772_vm13, %v1139_v27, %v2250_v25  ;;  %v1142_v29 = vsel %vm772_vm13, %v1140_v26, %v2251_v24 }
 0x53d   : > { %v1143_v31 = vpack.c.bf16 %v1142_v29, %v1141_v28  ;;  %v2306_v28 = vld [vmem:[%s2832_s9 + $0x28] sm:$0xff]  }
 0x53e   : > { %2149 = vmatpush3.bf16.msra.mxu0 %v2306_v28 }
 0x53f   : > { %2135 = vmatmul.mubr.msk.bf16.vlgmr.msra.gmra.mrb[4].mxu1 %vm831_vm14, %v1143_v31  ;;  %2162 = vmatprep.subr.bf16.mxu0 %v2379_v0 }
 0x540   : > { %2158 = vmatprep.mubr.msk.bf16.mxu1 %vm2381_vm5, %v2379_v0 }
 0x612   : > { %v1236_v36 = vpop.f32.mrb[4].mxu1 }
 0x613   : > { %v1237_v37 = vadd.f32 %v1992_v35, %v1236_v36  ;;  %v2136_v38 = vpop.f32.mrb[5].mxu1 }
 0x614   : > { %v1239_v39 = vpop.f32.mrb[6].mxu1 }
 0x615   : > { %v1245_v40 = vmul.f32 0.70710677, %v1237_v37  ;;  %v1240_v41 = vadd.f32 %v1992_v35, %v1239_v39  ;;  %v2137_v42 = vpop.f32.mrb[7].mxu1  ;;  %v1243_v25 = vmul.f32 0.5, %v1237_v37 }
 0x617   : > { %v1251_v43 = vand.u32 2147483647, %v1245_v40  ;;  %v1246_v44 = vmul.f32 0.70710677, %v1240_v41  ;;  %vm1247_vm6 = vcmp.ge.f32.partialorder %v1245_v40, 0.0  ;;  %v1244_v32 = vmul.f32 0.5, %v1240_v41 }
 0x618   : > { %v1249_v21 = vsel %vm1247_vm6, 1.0, %v2382_v6 }
 0x619   : > { %v1253_v45 = vmul.f32 0.3275911, %v1251_v43  ;;  %v1252_v46 = vand.u32 2147483647, %v1246_v44  ;;  %v1277_v51 = vsub.f32 0.0, %v1251_v43  ;;  %vm1248_vm7 = vcmp.ge.f32.partialorder %v1246_v44, 0.0 }
 0x61a   : > { %v1250_v26 = vsel %vm1248_vm7, 1.0, %v2382_v6 }
 0x61b   : > { %v1255_v47 = vadd.f32 1.0, %v1253_v45  ;;  %v1254_v48 = vmul.f32 0.3275911, %v1252_v46  ;;  %v1278_v49 = vsub.f32 0.0, %v1252_v46  ;;  %v1279_v54 = vmul.f32 %v1277_v51, %v1251_v43 }
 0x61d   : > { %2347 = vrcp.f32 %v1255_v47  ;;  %v1256_v50 = vadd.f32 1.0, %v1254_v48  ;;  %v1280_v57 = vmul.f32 %v1278_v49, %v1252_v46  ;;  %v1281_v58 = vmul.f32 1.442695, %v1279_v54 }
 0x61f   : > { %2349 = vrcp.f32 %v1256_v50  ;;  %v1283_v63 = vmul.f32 1.442695, %v1280_v57  ;;  %v2309_v57 = vld [vmem:[%s2834_s11] sm:$0xff]  }
 0x620   : > { %2351 = vpow2.f32 %v1281_v58  ;;  %v2310_v58 = vld [vmem:[%s2834_s11 + $0x8] sm:$0xff]  }
 0x621   : > { %2353 = vpow2.f32 %v1283_v63 }
 0x627   : > { %v2348_v52 = vpop.eup %2347 }
 0x628   : > { %v1259_v55 = vmul.f32 1.0614054, %v2348_v52 }
 0x629   : > { %v2350_v56 = vpop.eup %2349 }
 0x62a   : > { %v1261_v53 = vadd.f32 -1.4531521, %v1259_v55  ;;  %v1260_v59 = vmul.f32 1.0614054, %v2350_v56  ;;  %v2352_v12 = vpop.eup %2351 }
 0x62b   : > { %v2354_v17 = vpop.eup %2353 }
 0x62c   : > { %v1263_v60 = vmul.f32 %v2348_v52, %v1261_v53  ;;  %v1262_v61 = vadd.f32 -1.4531521, %v1260_v59  ;;  %v2308_v53 = vld [vmem:[%s2838_s15 + $0x8] sm:$0xff]   ;;  %v2311_v59 = vld [vmem:[%s2834_s11 + $0x10] sm:$0xff]  }
 0x62e   : > { %v1265_v62 = vadd.f32 1.4214138, %v1263_v60  ;;  %v1264_v1 = vmul.f32 %v2350_v56, %v1262_v61  ;;  %v2312_v60 = vld [vmem:[%s2834_s11 + $0x18] sm:$0xff]   ;;  %v2000_v61 = vld [vmem:[%s2833_s10] ss:$0 sm:$0xff] }
 0x630   : > { %v1267_v2 = vmul.f32 %v2348_v52, %v1265_v62  ;;  %v1266_v3 = vadd.f32 1.4214138, %v1264_v1 }
 0x632   : > { %v1269_v4 = vadd.f32 -0.28449672, %v1267_v2  ;;  %v1268_v5 = vmul.f32 %v2350_v56, %v1266_v3 }
 0x634   : > { %v1271_v7 = vmul.f32 %v2348_v52, %v1269_v4  ;;  %v1270_v8 = vadd.f32 -0.28449672, %v1268_v5 }
 0x636   : > { %v1273_v9 = vadd.f32 0.2548296, %v1271_v7  ;;  %v1272_v10 = vmul.f32 %v2350_v56, %v1270_v8 }
 0x638   : > { %v1275_v11 = vmul.f32 %v2348_v52, %v1273_v9  ;;  %v1274_v13 = vadd.f32 0.2548296, %v1272_v10 }
 0x63a   : > { %v1285_v15 = vmul.f32 %v2352_v12, %v1275_v11  ;;  %v1276_v16 = vmul.f32 %v2350_v56, %v1274_v13  ;;  %v2307_v56 = vld [vmem:[%s2838_s15] sm:$0xff]  }
 0x63b   : > { %2155 = vmatpush3.bf16.msra.mxu1 %v2307_v56 }
 0x63c   : > { %v1287_v19 = vsub.f32 1.0, %v1285_v15  ;;  %v1286_v22 = vmul.f32 %v2354_v17, %v1276_v16  ;;  %2156 = vmatprep.subr.bf16.mxu1 %v2379_v0 }
 0x63e   : > { %v1289_v23 = vmul.f32 %v1287_v19, %v1249_v21  ;;  %v1288_v24 = vsub.f32 1.0, %v1286_v22 }
 0x63f   : > { %2157 = vmatpush3.bf16.msra.mxu1 %v2308_v53 }
 0x640   : > { %v1291_v27 = vadd.f32 1.0, %v1289_v23  ;;  %v1290_v29 = vmul.f32 %v1288_v24, %v1250_v26  ;;  %2178 = vmatprep.subr.bf16.mxu1 %v2379_v0 }
 0x642   : > { %v1293_v31 = vmul.f32 %v1291_v27, %v1243_v25  ;;  %v1292_v33 = vadd.f32 1.0, %v1290_v29 }
 0x644   : > { %v1294_v34 = vmul.f32 %v1292_v33, %v1244_v32  ;;  %v1297_v30 = vrot.slane %v1293_v31, 6  ;;  %v1303_v35 = vrot.slane %v1293_v31, 2 }
 0x646   : > { %v1298_v36 = vrot.slane %v1294_v34, 6  ;;  %v2252_v38 = vpack.i.bf16 %v1294_v34, %v1293_v31  ;;  %v1304_v37 = vrot.slane %v1294_v34, 2  ;;  %v1302_v47 = vsel %vm1114_vm3, 0.0, %v1297_v30 }
 0x648   : > { %2253 = vrot.lane.b32.xlu1 %v2252_v38, %s2383_s29  ;;  %v1305_v39 = vsel %vm640_vm4, %v1303_v35, %v1304_v37  ;;  %v1307_v40 = vsel %vm640_vm4, %v1304_v37, 0.0  ;;  %v1299_v42 = vsel %vm1114_vm3, %v1297_v30, %v1298_v36 }
 0x649   : > { %v2257_v43 = vpack.i.bf16 %v1307_v40, %v1305_v39 }
 0x64c   : > { %2258 = vrot.lane.b32.xlu1 %v2257_v43, %s2384_s20 }
 0x6ba   : > { %v2254_v41 = vpop.permute.xlu1 %2253 }
 0x6bb   : > { %v2256_v44 = vunpack.i.h.bf16 %v2254_v41  ;;  %v2255_v45 = vunpack.i.l.bf16 %v2254_v41 }
 0x6bd   : > { %v1321_v51 = vsel %vm769_vm12, %v1302_v47, %v2255_v45  ;;  %v1322_v49 = vsel %vm769_vm12, %v1299_v42, %v2256_v44  ;;  %v2313_v45 = vld [vmem:[%s2834_s11 + $0x20] sm:$0xff]  }
 0x6be   : > { %v2259_v46 = vpop.permute.xlu1 %2258 }
 0x6bf   : > { %v2261_v48 = vunpack.i.h.bf16 %v2259_v46  ;;  %v2260_v50 = vunpack.i.l.bf16 %v2259_v46 }
 0x6c1   : > { %v1323_v52 = vsel %vm772_vm13, %v1321_v51, %v2260_v50  ;;  %v1324_v54 = vsel %vm772_vm13, %v1322_v49, %v2261_v48 }
 0x6c2   : > { %v1325_v55 = vpack.c.bf16 %v1324_v54, %v1323_v52  ;;  %v2314_v52 = vld [vmem:[%s2834_s11 + $0x28] sm:$0xff]  }
 0x6c4   : > { %2151 = vmatmul.mubr.msk.bf16.vlgmr.msra.gmra.mrb[8].mxu0 %vm831_vm14, %v1325_v55 }
 0x6c5   : > { %2174 = vmatprep.mubr.msk.bf16.mxu0 %vm2381_vm5, %v2379_v0  ;;  %2163 = vmatpush3.bf16.msra.mxu0 %v2309_v57 }
 0x6c6   : > { %2164 = vmatprep.subr.bf16.mxu0 %v2379_v0 }
 0x6c9   : > { %2165 = vmatpush3.bf16.msra.mxu0 %v2310_v58 }
 0x6ca   : > { %2166 = vmatprep.subr.bf16.mxu0 %v2379_v0 }
 0x6cd   : > { %2167 = vmatpush3.bf16.msra.mxu0 %v2311_v59 }
 0x6ce   : > { %2168 = vmatprep.subr.bf16.mxu0 %v2379_v0 }
 0x6d1   : > { %2169 = vmatpush3.bf16.msra.mxu0 %v2312_v60 }
 0x6d2   : > { %2170 = vmatprep.subr.bf16.mxu0 %v2379_v0 }
 0x6d5   : > { %2171 = vmatpush3.bf16.msra.mxu0 %v2313_v45 }
 0x6d6   : > { %2172 = vmatprep.subr.bf16.mxu0 %v2379_v0 }
 0x6d9   : > { %2173 = vmatpush3.bf16.msra.mxu0 %v2314_v52 }
 0x6da   : > { %2194 = vmatprep.subr.bf16.mxu0 %v2379_v0 }
 0x797   : > { %v1418_v62 = vpop.f32.mrb[8].mxu0 }
 0x798   : > { %v1419_v63 = vadd.f32 %v2000_v61, %v1418_v62  ;;  %v2152_v1 = vpop.f32.mrb[9].mxu0 }
 0x799   : > { %v1421_v2 = vpop.f32.mrb[10].mxu0 }
 0x79a   : > { %v1425_v3 = vadd.f32 %v1419_v63, %v2633_v14  ;;  %v1422_v4 = vadd.f32 %v2000_v61, %v1421_v2  ;;  %v2153_v5 = vpop.f32.mrb[11].mxu0 }
 0x79c   : > { %v1496_v7 = vmul.f32 0.70710677, %v1425_v3  ;;  %v1426_v8 = vadd.f32 %v1422_v4, %v2637_v18  ;;  %v1494_v56 = vmul.f32 0.5, %v1425_v3 }
 0x79e   : > { %v1502_v9 = vand.u32 2147483647, %v1496_v7  ;;  %v1427_v10 = vpack.c.bf16 %v1426_v8, %v1425_v3  ;;  %v1497_v11 = vmul.f32 0.70710677, %v1426_v8  ;;  %vm1498_vm4 = vcmp.ge.f32.partialorder %v1496_v7, 0.0 }
 0x79f   : > { %v1500_v48 = vsel %vm1498_vm4, 1.0, %v2382_v6  ;;  %v1495_v57 = vmul.f32 0.5, %v1426_v8 }
 0x7a0   : > { %v1504_v12 = vmul.f32 0.3275911, %v1502_v9  ;;  %2159 = vmatmul.mubr.msk.bf16.vlgmr.msra.gmra.mrb[8].mxu1 %vm769_vm12, %v1427_v10  ;;  %v1503_v13 = vand.u32 2147483647, %v1497_v11  ;;  %v1528_v14 = vsub.f32 0.0, %v1502_v9  ;;  %vm1499_vm8 = vcmp.ge.f32.partialorder %v1497_v11, 0.0 }
 0x7a1   : > { %2190 = vmatprep.mubr.msk.bf16.mxu1 %vm2381_vm5, %v2379_v0  ;;  %v1501_v54 = vsel %vm1499_vm8, 1.0, %v2382_v6 }
 0x7a2   : > { %v1506_v15 = vadd.f32 1.0, %v1504_v12  ;;  %v1505_v16 = vmul.f32 0.3275911, %v1503_v13  ;;  %v1529_v19 = vsub.f32 0.0, %v1503_v13  ;;  %v1530_v21 = vmul.f32 %v1528_v14, %v1502_v9  ;;  %v2315_v14 = vld [vmem:[%s2836_s13] sm:$0xff]  }
 0x7a3   : > { %2179 = vmatpush3.bf16.msra.mxu1 %v2315_v14 }
 0x7a4   : > { %2355 = vrcp.f32 %v1506_v15  ;;  %v1507_v17 = vadd.f32 1.0, %v1505_v16  ;;  %v1531_v23 = vmul.f32 %v1529_v19, %v1503_v13  ;;  %v1532_v25 = vmul.f32 1.442695, %v1530_v21  ;;  %v2316_v19 = vld [vmem:[%s2836_s13 + $0x8] sm:$0xff]   ;;  %2180 = vmatprep.subr.bf16.mxu1 %v2379_v0  ;;  %v2318_v21 = vld [vmem:[%s2836_s13 + $0x18] sm:$0xff]  }
 0x7a6   : > { %2357 = vrcp.f32 %v1507_v17  ;;  %v1534_v29 = vmul.f32 1.442695, %v1531_v23 }
 0x7a7   : > { %2359 = vpow2.f32 %v1532_v25  ;;  %2181 = vmatpush3.bf16.msra.mxu1 %v2316_v19 }
 0x7a8   : > { %2361 = vpow2.f32 %v1534_v29  ;;  %2182 = vmatprep.subr.bf16.mxu1 %v2379_v0 }
 0x7ae   : > { %v2356_v20 = vpop.eup %2355 }
 0x7af   : > { %v1510_v18 = vmul.f32 1.0614054, %v2356_v20 }
 0x7b0   : > { %v2358_v22 = vpop.eup %2357 }
 0x7b1   : > { %v1512_v24 = vadd.f32 -1.4531521, %v1510_v18  ;;  %v1511_v27 = vmul.f32 1.0614054, %v2358_v22  ;;  %v2360_v42 = vpop.eup %2359  ;;  %v2012_v18 = vld [vmem:[%s2835_s12] ss:$0 sm:$0xff] }
 0x7b2   : > { %v2362_v46 = vpop.eup %2361 }
 0x7b3   : > { %v1514_v26 = vmul.f32 %v2356_v20, %v1512_v24  ;;  %v1513_v28 = vadd.f32 -1.4531521, %v1511_v27 }
 0x7b5   : > { %v1516_v31 = vadd.f32 1.4214138, %v1514_v26  ;;  %v1515_v32 = vmul.f32 %v2358_v22, %v1513_v28 }
 0x7b7   : > { %v1518_v33 = vmul.f32 %v2356_v20, %v1516_v31  ;;  %v1517_v34 = vadd.f32 1.4214138, %v1515_v32 }
 0x7b9   : > { %v1520_v30 = vadd.f32 -0.28449672, %v1518_v33  ;;  %v1519_v35 = vmul.f32 %v2358_v22, %v1517_v34 }
 0x7bb   : > { %v1522_v36 = vmul.f32 %v2356_v20, %v1520_v30  ;;  %v1521_v38 = vadd.f32 -0.28449672, %v1519_v35 }
 0x7bd   : > { %v1524_v37 = vadd.f32 0.2548296, %v1522_v36  ;;  %v1523_v39 = vmul.f32 %v2358_v22, %v1521_v38 }
 0x7bf   : > { %v1526_v40 = vmul.f32 %v2356_v20, %v1524_v37  ;;  %v1525_v43 = vadd.f32 0.2548296, %v1523_v39  ;;  %v2317_v20 = vld [vmem:[%s2836_s13 + $0x10] sm:$0xff]  }
 0x7c0   : > { %2183 = vmatpush3.bf16.msra.mxu1 %v2317_v20 }
 0x7c1   : > { %v1536_v41 = vmul.f32 %v2360_v42, %v1526_v40  ;;  %v1527_v44 = vmul.f32 %v2358_v22, %v1525_v43  ;;  %2184 = vmatprep.subr.bf16.mxu1 %v2379_v0 }
 0x7c3   : > { %v1538_v47 = vsub.f32 1.0, %v1536_v41  ;;  %v1537_v50 = vmul.f32 %v2362_v46, %v1527_v44 }
 0x7c4   : > { %2185 = vmatpush3.bf16.msra.mxu1 %v2318_v21 }
 0x7c5   : > { %v1540_v51 = vmul.f32 %v1538_v47, %v1500_v48  ;;  %v1539_v49 = vsub.f32 1.0, %v1537_v50  ;;  %2186 = vmatprep.subr.bf16.mxu1 %v2379_v0 }
 0x7c7   : > { %v1542_v55 = vadd.f32 1.0, %v1540_v51  ;;  %v1541_v53 = vmul.f32 %v1539_v49, %v1501_v54 }
 0x7c9   : > { %v1543_v58 = vadd.f32 1.0, %v1541_v53  ;;  %v1544_v59 = vmul.f32 %v1542_v55, %v1494_v56 }
 0x7cb   : > { %v1545_v60 = vmul.f32 %v1543_v58, %v1495_v57  ;;  %v1549_v61 = vrot.slane %v1544_v59, 4 }
 0x7cd   : > { %v2262_v62 = vpack.i.bf16 %v1545_v60, %v1544_v59  ;;  %v1550_v63 = vrot.slane %v1545_v60, 4  ;;  %v1554_v9 = vsel %vm1548_vm9, 0.0, %v1549_v61 }
 0x7cf   : > { %2263 = vrot.lane.b32.xlu1 %v2262_v62, %s2383_s29  ;;  %v1551_v1 = vsel %vm1548_vm9, %v1549_v61, %v1550_v63  ;;  %v1556_v2 = vsel %vm1548_vm9, %v1550_v63, 0.0 }
 0x7d0   : > { %v2267_v4 = vpack.i.bf16 %v1556_v2, %v1551_v1 }
 0x7d2   : > { %2268 = vrot.lane.b32.xlu0 %v2267_v4, %s2384_s20 }
 0x841   : > { %v2264_v3 = vpop.permute.xlu1 %2263 }
 0x842   : > { %v2266_v5 = vunpack.i.h.bf16 %v2264_v3  ;;  %v2265_v7 = vunpack.i.l.bf16 %v2264_v3 }
 0x844   : > { %v2269_v8 = vpop.permute.xlu0 %2268  ;;  %v1570_v12 = vsel %vm769_vm12, %v1554_v9, %v2265_v7  ;;  %v1571_v13 = vsel %vm769_vm12, %v1551_v1, %v2266_v5  ;;  %v2319_v1 = vld [vmem:[%s2836_s13 + $0x20] sm:$0xff]   ;;  %v2320_v9 = vld [vmem:[%s2836_s13 + $0x28] sm:$0xff]  }
 0x845   : > { %v2271_v10 = vunpack.i.h.bf16 %v2269_v8  ;;  %v2270_v11 = vunpack.i.l.bf16 %v2269_v8  ;;  %2187 = vmatpush3.bf16.msra.mxu1 %v2319_v1 }
 0x846   : > { %2188 = vmatprep.subr.bf16.mxu1 %v2379_v0 }
 0x847   : > { %v1572_v15 = vsel %vm772_vm13, %v1570_v12, %v2270_v11  ;;  %v1573_v16 = vsel %vm772_vm13, %v1571_v13, %v2271_v10 }
 0x848   : > { %v1574_v17 = vpack.c.bf16 %v1573_v16, %v1572_v15 }
 0x849   : > { %2189 = vmatpush3.bf16.msra.mxu1 %v2320_v9 }
 0x84a   : > { %2175 = vmatmul.mubr.msk.bf16.vlgmr.msra.gmra.mrb[12].mxu0 %vm831_vm14, %v1574_v17 }
 0x84b   : > { %2198 = vmatprep.mubr.msk.bf16.mxu0 %vm2381_vm5, %v2379_v0 }
 0x91d   : > { %v1667_v22 = vpop.f32.mrb[12].mxu0 }
 0x91e   : > { %v1668_v23 = vadd.f32 %v2012_v18, %v1667_v22  ;;  %v2176_v24 = vpop.f32.mrb[13].mxu0 }
 0x91f   : > { %v1670_v25 = vpop.f32.mrb[14].mxu0 }
 0x920   : > { %v1676_v27 = vmul.f32 0.70710677, %v1668_v23  ;;  %v1671_v26 = vadd.f32 %v2012_v18, %v1670_v25  ;;  %v2177_v28 = vpop.f32.mrb[15].mxu0  ;;  %v1674_v12 = vmul.f32 0.5, %v1668_v23 }
 0x922   : > { %v1682_v29 = vand.u32 2147483647, %v1676_v27  ;;  %v1677_v31 = vmul.f32 0.70710677, %v1671_v26  ;;  %vm1678_vm5 = vcmp.ge.f32.partialorder %v1676_v27, 0.0  ;;  %v1675_v16 = vmul.f32 0.5, %v1671_v26 }
 0x923   : > { %v1680_v3 = vsel %vm1678_vm5, 1.0, %v2382_v6 }
 0x924   : > { %v1684_v32 = vmul.f32 0.3275911, %v1682_v29  ;;  %v1683_v33 = vand.u32 2147483647, %v1677_v31  ;;  %v1708_v36 = vsub.f32 0.0, %v1682_v29  ;;  %vm1679_vm10 = vcmp.ge.f32.partialorder %v1677_v31, 0.0 }
 0x925   : > { %v1681_v11 = vsel %vm1679_vm10, 1.0, %v2382_v6 }
 0x926   : > { %v1686_v34 = vadd.f32 1.0, %v1684_v32  ;;  %v1685_v30 = vmul.f32 0.3275911, %v1683_v33  ;;  %v1709_v38 = vsub.f32 0.0, %v1683_v33  ;;  %v1710_v39 = vmul.f32 %v1708_v36, %v1682_v29  ;;  %v2322_v36 = vld [vmem:[%s2840_s17 + $0x8] sm:$0xff]  }
 0x928   : > { %2363 = vrcp.f32 %v1686_v34  ;;  %v1687_v35 = vadd.f32 1.0, %v1685_v30  ;;  %v1711_v41 = vmul.f32 %v1709_v38, %v1683_v33  ;;  %v1712_v44 = vmul.f32 1.442695, %v1710_v39  ;;  %v2008_v38 = vld [vmem:[%s2839_s16] ss:$0 sm:$0xff] }
 0x92a   : > { %2365 = vrcp.f32 %v1687_v35  ;;  %v1714_v50 = vmul.f32 1.442695, %v1711_v41  ;;  %v2321_v35 = vld [vmem:[%s2840_s17] sm:$0xff]  }
 0x92b   : > { %2367 = vpow2.f32 %v1712_v44  ;;  %2195 = vmatpush3.bf16.msra.mxu0 %v2321_v35 }
 0x92c   : > { %2369 = vpow2.f32 %v1714_v50  ;;  %2196 = vmatprep.subr.bf16.mxu0 %v2379_v0 }
 0x92f   : > { %2197 = vmatpush3.bf16.msra.mxu0 %v2322_v36 }
 0x932   : > { %v2364_v37 = vpop.eup %2363 }
 0x933   : > { %v1690_v40 = vmul.f32 1.0614054, %v2364_v37 }
 0x934   : > { %v2366_v42 = vpop.eup %2365 }
 0x935   : > { %v1692_v43 = vadd.f32 -1.4531521, %v1690_v40  ;;  %v1691_v45 = vmul.f32 1.0614054, %v2366_v42  ;;  %v2368_v60 = vpop.eup %2367 }
 0x936   : > { %v2370_v2 = vpop.eup %2369 }
 0x937   : > { %v1694_v46 = vmul.f32 %v2364_v37, %v1692_v43  ;;  %v1693_v47 = vadd.f32 -1.4531521, %v1691_v45 }
 0x939   : > { %v1696_v48 = vadd.f32 1.4214138, %v1694_v46  ;;  %v1695_v51 = vmul.f32 %v2366_v42, %v1693_v47  ;;  %v1858_v47 = vld [vmem:[%s2841_s18] sm:$0x1] }
 0x93b   : > { %v1698_v49 = vmul.f32 %v2364_v37, %v1696_v48  ;;  %v1697_v52 = vadd.f32 1.4214138, %v1695_v51 }
 0x93d   : > { %v1700_v54 = vadd.f32 -0.28449672, %v1698_v49  ;;  %v1699_v55 = vmul.f32 %v2366_v42, %v1697_v52 }
 0x93f   : > { %v1702_v56 = vmul.f32 %v2364_v37, %v1700_v54  ;;  %v1701_v53 = vadd.f32 -0.28449672, %v1699_v55 }
 0x941   : > { %v1704_v57 = vadd.f32 0.2548296, %v1702_v56  ;;  %v1703_v58 = vmul.f32 %v2366_v42, %v1701_v53 }
 0x943   : > { %v1706_v59 = vmul.f32 %v2364_v37, %v1704_v57  ;;  %v1705_v61 = vadd.f32 0.2548296, %v1703_v58  ;;  %v2020_v37 = vld [vmem:[%s2837_s14] ss:$0 sm:$0xff] }
 0x944   : > { %v2202_v39 = vadd.f32 %v2020_v37, %v2008_v38 }
 0x945   : > { %v1716_v62 = vmul.f32 %v2368_v60, %v1706_v59  ;;  %v1707_v63 = vmul.f32 %v2366_v42, %v1705_v61 }
 0x947   : > { %v1718_v4 = vsub.f32 1.0, %v1716_v62  ;;  %v1717_v5 = vmul.f32 %v2370_v2, %v1707_v63 }
 0x949   : > { %v1720_v7 = vmul.f32 %v1718_v4, %v1680_v3  ;;  %v1719_v8 = vsub.f32 1.0, %v1717_v5 }
 0x94b   : > { %v1722_v10 = vadd.f32 1.0, %v1720_v7  ;;  %v1721_v13 = vmul.f32 %v1719_v8, %v1681_v11 }
 0x94d   : > { %v1724_v15 = vmul.f32 %v1722_v10, %v1674_v12  ;;  %v1723_v17 = vadd.f32 1.0, %v1721_v13 }
 0x94f   : > { %v1725_v14 = vmul.f32 %v1723_v17, %v1675_v16  ;;  %v1728_v19 = vrot.slane %v1724_v15, 4 }
 0x951   : > { %v1729_v20 = vrot.slane %v1725_v14, 4  ;;  %v2272_v21 = vpack.i.bf16 %v1725_v14, %v1724_v15  ;;  %v1733_v26 = vsel %vm1548_vm9, 0.0, %v1728_v19 }
 0x953   : > { %2273 = vrot.lane.b32.xlu1 %v2272_v21, %s2383_s29  ;;  %v1730_v18 = vsel %vm1548_vm9, %v1728_v19, %v1729_v20  ;;  %v1735_v22 = vsel %vm1548_vm9, %v1729_v20, 0.0  ;;  %s598_s29 = scalar_lea.vmem %s2842_s19, %s2853_s30 }
 0x954   : > { %v2277_v24 = vpack.i.bf16 %v1735_v22, %v1730_v18 }
 0x956   : > { %2278 = vrot.lane.b32.xlu0 %v2277_v24, %s2384_s20 }
 0x9c5   : > { %v2274_v6 = vpop.permute.xlu1 %2273 }
 0x9c6   : > { %v2276_v23 = vunpack.i.h.bf16 %v2274_v6  ;;  %v2275_v25 = vunpack.i.l.bf16 %v2274_v6 }
 0x9c8   : > { %v2279_v27 = vpop.permute.xlu0 %2278  ;;  %v1749_v31 = vsel %vm769_vm12, %v1733_v26, %v2275_v25  ;;  %v1750_v32 = vsel %vm769_vm12, %v1730_v18, %v2276_v23 }
 0x9c9   : > { %v2281_v28 = vunpack.i.h.bf16 %v2279_v27  ;;  %v2280_v29 = vunpack.i.l.bf16 %v2279_v27 }
 0x9cb   : > { %v1751_v33 = vsel %vm772_vm13, %v1749_v31, %v2280_v29  ;;  %v1752_v34 = vsel %vm772_vm13, %v1750_v32, %v2281_v28 }
 0x9cc   : > { %v1753_v30 = vpack.c.bf16 %v1752_v34, %v1751_v33 }
 0x9ce   : > { %2191 = vmatmul.mubr.msk.bf16.vlgmr.msra.gmra.mrb[8].mxu1 %vm831_vm14, %v1753_v30 }
 0xaa1   : > { %v1846_v40 = vpop.f32.mrb[8].mxu1 }
 0xaa2   : > { %v2192_v42 = vpop.f32.mrb[9].mxu1 }
 0xaa3   : > { %v1848_v43 = vpop.f32.mrb[10].mxu1 }
 0xaa4   : > { %v2203_v41 = vadd.f32 %v2202_v39, %v1848_v43  ;;  %v2193_v0 = vpop.f32.mrb[11].mxu1 }
 0xaa6   : > { %v1853_v44 = vpack.c.bf16 %v2203_v41, %v2203_v41 }
 0xaa8   : > { %v1860_v45 = vshrl.u32 %v1853_v44, 16 }
 0xaaa   : > { %v1862_v46 = vrot.slane %v1860_v45, 3 }
 0xaac   : > { %2199 = vmatmul.mubr.msk.bf16.vlgmr.msra.gmra.mrb[16].mxu0 %vm769_vm12, %v1862_v46 }
 0xb7f   : > { %v1912_v48 = vpop.f32.mrb[16].mxu0 }
 0xb80   : > { %v1913_v50 = vadd.f32 %v1912_v48, %v1858_v47  ;;  %v2200_v51 = vpop.f32.mrb[17].mxu0 }
 0xb81   : > { %v1915_v49 = vpop.f32.mrb[18].mxu0 }
 0xb82   : > { %1918 = vst [vmem:[%s598_s29] sm:$0x1] %v1913_v50  ;;  %v2201_v52 = vpop.f32.mrb[19].mxu0 }
 0xb83 PF: > { %s29_s0 = sadd.s32 1, %s2377_s0  }
 0xb84   : > { %p26_p4 = scmp.ge.s32.totalorder %s29_s0, 4  }
 0xb86   :  { %28 = sbr.rel (!%p26_p4) target bundleno = 5 (0x5), region = 126 }

</bundles_post_ra>
